<compile_context>
chip_gen: v7x
topology: tpu7x:2x2x1
jax: 0.10.0
libtpu: 0.0.40
codegen_flags: <defaults>
</compile_context>

<pallas_src>
import jax
import jax.numpy as jnp
from jax.experimental import pallas as pl
from jax.experimental.pallas import tpu as pltpu

LEAKY_SLOPE = 0.01      # nn.LeakyReLU default negative_slope
OUT_SCALE = 0.16667     # literal constant from the PyTorch forward()
_LANE = 128


def _round_up(n, m):
    return ((n + m - 1) // m) * m


def _leaky_relu(x):
    return jnp.where(x >= 0, x, LEAKY_SLOPE * x)


def _make_kernel(mxu_dtype):
    def kernel(xt_ref, w1_ref, w3_ref, w4_ref, w5_ref, w6_ref, w7_ref,
               b_ref, out_ref):
        def mm(w_ref, a):
            # MXU matmul; operands optionally cast to bf16, f32 accumulate.
            return jnp.dot(w_ref[...].astype(mxu_dtype), a.astype(mxu_dtype),
                           preferred_element_type=jnp.float32)

        b = b_ref[...]                                          # (128, 8) f32
        # Activations are (features, TILE_B): batch on the lane axis.
        h = _leaky_relu(mm(w1_ref, xt_ref[...]) + b[:, 0:1])    # (128, TB)
        h = _leaky_relu(mm(w3_ref, h) + b[:, 1:2])              # (128, TB)
        h = _leaky_relu(mm(w4_ref, h) + b[:, 2:3])              # (128, TB)  (l4: 64 padded)
        h = _leaky_relu(mm(w5_ref, h) + b[:, 3:4])              # (128, TB)  (l5: 32 padded)
        h = _leaky_relu(mm(w6_ref, h) + b[:, 4:5])              # (128, TB)  (l6: 16 padded)
        z = mm(w7_ref, h) + b[0:2, 5:6]                         # (2, TB)
        z = jnp.clip(z, 0.0, 6.0) * OUT_SCALE                   # ReLU6 * 0.16667
        out_ref[...] = z.astype(out_ref.dtype)                  # lane-dense store

    return kernel


def neural_net_ctrl_forward(x, params, *, tile_b=512, mxu_dtype=jnp.float32):
    """x: (B, 5) float32. params: dict from init_params()[0]. Returns (B, 2)."""
    B, F = x.shape
    assert F == 5

    tb = min(_round_up(max(B, 1), _LANE), _round_up(tile_b, _LANE))
    b_pad = _round_up(B, tb)
    n_tiles = b_pad // tb

    # Transposed, zero-padded input: (5, B_pad) -- batch on the lane axis.
    xt = jnp.zeros((F, b_pad), jnp.float32).at[:, :B].set(x.T.astype(jnp.float32))

    w1, w3, w4, w5, w6, w7 = (params[k] for k in ("w1", "w3", "w4", "w5", "w6", "w7"))
    bias = params["bias"]

    batch_map = lambda i: (0, i)
    const_map = lambda i: (0, 0)   # weights/biases stay VMEM-resident across tiles

    out_t = pl.pallas_call(
        _make_kernel(mxu_dtype),
        out_shape=jax.ShapeDtypeStruct((2, b_pad), jnp.float32),
        grid=(n_tiles,),
        in_specs=[
            pl.BlockSpec((F, tb), batch_map),        # x^T tile
            pl.BlockSpec(w1.shape, const_map),       # (128, 5)
            pl.BlockSpec(w3.shape, const_map),       # (128, 128)
            pl.BlockSpec(w4.shape, const_map),       # (128, 128) padded
            pl.BlockSpec(w5.shape, const_map),       # (128, 128) padded
            pl.BlockSpec(w6.shape, const_map),       # (128, 128) padded
            pl.BlockSpec(w7.shape, const_map),       # (2, 128)   padded
            pl.BlockSpec(bias.shape, const_map),     # (128, 8)   packed biases
        ],
        out_specs=pl.BlockSpec((2, tb), batch_map),  # lane-dense output tile
        compiler_params=pltpu.CompilerParams(
            dimension_semantics=("parallel",),       # shard batch across TCs (v7x)
        ),
    )(xt, w1, w3, w4, w5, w6, w7, bias)

    # (2, B_pad) -> (B, 2)
    return out_t.T[:B]


# ----------------------------- parameters ---------------------------------

_LAYER_DIMS = (("l1", 5, 128), ("l3", 128, 128), ("l4", 128, 64),
               ("l5", 64, 32), ("l6", 32, 16), ("l7", 16, 2))


def _kaiming_normal_fan_out(key, out_f, in_f, a=LEAKY_SLOPE):
    # kaiming_normal_(mode='fan_out', nonlinearity='leaky_relu') on (out, in):
    # gain = sqrt(2 / (1 + a^2)), std = gain / sqrt(out_features)
    gain = (2.0 / (1.0 + a * a)) ** 0.5
    std = gain / (out_f ** 0.5)
    return std * jax.random.normal(key, (out_f, in_f), dtype=jnp.float32)


def _linear_bias(key, out_f, in_f):
    # nn.Linear default bias init: U(-1/sqrt(fan_in), 1/sqrt(fan_in))
    bound = 1.0 / (in_f ** 0.5)
    return jax.random.uniform(key, (out_f,), dtype=jnp.float32,
                              minval=-bound, maxval=bound)


def pack_params(raw):
    """Zero-pad narrow layers to 128 lanes and pack biases into one (128,8)."""
    def pad_w(w, out_pad, in_pad):
        out_f, in_f = w.shape
        return jnp.zeros((out_pad, in_pad), jnp.float32).at[:out_f, :in_f].set(w)

    packed = {
        "w1": raw["l1"][0],                       # (128, 5)
        "w3": raw["l3"][0],                       # (128, 128)
        "w4": pad_w(raw["l4"][0], 128, 128),      # (64, 128)  -> (128, 128)
        "w5": pad_w(raw["l5"][0], 128, 128),      # (32, 64)   -> (128, 128)
        "w6": pad_w(raw["l6"][0], 128, 128),      # (16, 32)   -> (128, 128)
        "w7": pad_w(raw["l7"][0], 2, 128),        # (2, 16)    -> (2, 128)
    }
    bias = jnp.zeros((128, 8), jnp.float32)
    for col, name in enumerate(("l1", "l3", "l4", "l5", "l6", "l7")):
        b = raw[name][1]
        bias = bias.at[: b.shape[0], col].set(b)
    packed["bias"] = bias
    return packed


def init_params(key):
    raw = {}
    for name, fi, fo in _LAYER_DIMS:
        key, kw, kb = jax.random.split(key, 3)
        raw[name] = (_kaiming_normal_fan_out(kw, fo, fi), _linear_bias(kb, fo, fi))
    return pack_params(raw), raw


def reference_forward(x, raw):
    """Pure-JAX replica of the PyTorch forward() for validation."""
    h = x
    for name in ("l1", "l3", "l4", "l5", "l6"):
        w, b = raw[name]
        h = jnp.matmul(h, w.T, precision=jax.lax.Precision.HIGHEST) + b
        h = jnp.where(h >= 0, h, LEAKY_SLOPE * h)
    w, b = raw["l7"]
    h = jnp.matmul(h, w.T, precision=jax.lax.Precision.HIGHEST) + b
    return jnp.clip(h, 0.0, 6.0) * OUT_SCALE


if __name__ == "__main__":
    key = jax.random.PRNGKey(0)
    key, kx = jax.random.split(key)

    B = 8
    x = jax.random.normal(kx, (B, 5), dtype=jnp.float32)
    params, raw = init_params(key)

    # f32 path (exactly matches the PyTorch-semantics reference).
    out = neural_net_ctrl_forward(x, params)
    out = jax.block_until_ready(out)
    assert out.shape == (B, 2) and out.dtype == jnp.float32
    ref = reference_forward(x, raw)
    assert bool(jnp.allclose(out, ref, atol=2e-3, rtol=2e-3))
    assert bool(jnp.all(out >= 0.0)) and bool(jnp.all(out <= 6.0 * OUT_SCALE + 1e-6))

    # bf16 MXU-operand path (perf option for v6e/v7x; f32 accumulation).
    out_bf16 = neural_net_ctrl_forward(x, params, mxu_dtype=jnp.bfloat16)
    out_bf16 = jax.block_until_ready(out_bf16)
    assert out_bf16.shape == (B, 2)
    assert bool(jnp.allclose(out_bf16, ref, atol=8e-2, rtol=8e-2))

    print("KERNEL_OK")
</pallas_src>

<mosaic_0001>
module attributes {stable_mosaic.version = 11 : i64} {
  func.func @kernel(%arg0: i32, %arg1: memref<5x128xf32, #tpu.memory_space<vmem>>, %arg2: memref<128x5xf32, #tpu.memory_space<vmem>>, %arg3: memref<128x128xf32, #tpu.memory_space<vmem>>, %arg4: memref<128x128xf32, #tpu.memory_space<vmem>>, %arg5: memref<128x128xf32, #tpu.memory_space<vmem>>, %arg6: memref<128x128xf32, #tpu.memory_space<vmem>>, %arg7: memref<2x128xf32, #tpu.memory_space<vmem>>, %arg8: memref<128x8xf32, #tpu.memory_space<vmem>>, %arg9: memref<2x128xf32, #tpu.memory_space<vmem>>) attributes {dimension_semantics = [#tpu.dimension_semantics<parallel>], iteration_bounds = array<i64: 1>, scalar_prefetch = 0 : i64, scratch_operands = 0 : i64, tpu.core_type = #tpu.core_type<tc>, window_params = [{transform_indices = @transform_0, window_bounds = array<i64: 5, 128>}, {pipeline_mode = #tpu.pipeline_mode<synchronous>, transform_indices = @transform_1, window_bounds = array<i64: 128, 5>}, {pipeline_mode = #tpu.pipeline_mode<synchronous>, transform_indices = @transform_2, window_bounds = array<i64: 128, 128>}, {pipeline_mode = #tpu.pipeline_mode<synchronous>, transform_indices = @transform_3, window_bounds = array<i64: 128, 128>}, {pipeline_mode = #tpu.pipeline_mode<synchronous>, transform_indices = @transform_4, window_bounds = array<i64: 128, 128>}, {pipeline_mode = #tpu.pipeline_mode<synchronous>, transform_indices = @transform_5, window_bounds = array<i64: 128, 128>}, {pipeline_mode = #tpu.pipeline_mode<synchronous>, transform_indices = @transform_6, window_bounds = array<i64: 2, 128>}, {pipeline_mode = #tpu.pipeline_mode<synchronous>, transform_indices = @transform_7, window_bounds = array<i64: 128, 8>}, {transform_indices = @transform_8, window_bounds = array<i64: 2, 128>}]} {
    %c0 = arith.constant 0 : index
    %c0_0 = arith.constant 0 : index
    %0 = vector.load %arg8[%c0, %c0_0] : memref<128x8xf32, #tpu.memory_space<vmem>>, vector<128x8xf32>
    %c0_1 = arith.constant 0 : index
    %c0_2 = arith.constant 0 : index
    %1 = vector.load %arg1[%c0_1, %c0_2] : memref<5x128xf32, #tpu.memory_space<vmem>>, vector<5x128xf32>
    %c0_3 = arith.constant 0 : index
    %c0_4 = arith.constant 0 : index
    %2 = vector.load %arg2[%c0_3, %c0_4] : memref<128x5xf32, #tpu.memory_space<vmem>>, vector<128x5xf32>
    %cst = arith.constant dense<0.000000e+00> : vector<128x128xf32>
    %3 = tpu.matmul %2, %1, %cst {dimension_numbers = #tpu.dot_dimension_numbers<[1], [0], [0], [1], [0, 0, 1, 1], [], []>} : vector<128x5xf32>, vector<5x128xf32>, vector<128x128xf32> -> vector<128x128xf32>
    %4 = vector.extract_strided_slice %0 {offsets = [0, 0], sizes = [128, 1], strides = [1, 1]} : vector<128x8xf32> to vector<128x1xf32>
    %5 = vector.broadcast %4 : vector<128x1xf32> to vector<128x128xf32>
    %6 = arith.addf %3, %5 : vector<128x128xf32>
    %cst_5 = arith.constant 0.000000e+00 : f32
    %7 = vector.broadcast %cst_5 : f32 to vector<128x128xf32>
    %8 = arith.cmpf oge, %6, %7 : vector<128x128xf32>
    %cst_6 = arith.constant 0.00999999977 : f32
    %9 = vector.broadcast %cst_6 : f32 to vector<128x128xf32>
    %10 = arith.mulf %9, %6 : vector<128x128xf32>
    %11 = arith.select %8, %6, %10 : vector<128x128xi1>, vector<128x128xf32>
    %c0_7 = arith.constant 0 : index
    %c0_8 = arith.constant 0 : index
    %12 = vector.load %arg3[%c0_7, %c0_8] : memref<128x128xf32, #tpu.memory_space<vmem>>, vector<128x128xf32>
    %cst_9 = arith.constant dense<0.000000e+00> : vector<128x128xf32>
    %13 = tpu.matmul %12, %11, %cst_9 {dimension_numbers = #tpu.dot_dimension_numbers<[1], [0], [0], [1], [0, 0, 1, 1], [], []>} : vector<128x128xf32>, vector<128x128xf32>, vector<128x128xf32> -> vector<128x128xf32>
    %14 = vector.extract_strided_slice %0 {offsets = [0, 1], sizes = [128, 1], strides = [1, 1]} : vector<128x8xf32> to vector<128x1xf32>
    %15 = vector.broadcast %14 : vector<128x1xf32> to vector<128x128xf32>
    %16 = arith.addf %13, %15 : vector<128x128xf32>
    %cst_10 = arith.constant 0.000000e+00 : f32
    %17 = vector.broadcast %cst_10 : f32 to vector<128x128xf32>
    %18 = arith.cmpf oge, %16, %17 : vector<128x128xf32>
    %cst_11 = arith.constant 0.00999999977 : f32
    %19 = vector.broadcast %cst_11 : f32 to vector<128x128xf32>
    %20 = arith.mulf %19, %16 : vector<128x128xf32>
    %21 = arith.select %18, %16, %20 : vector<128x128xi1>, vector<128x128xf32>
    %c0_12 = arith.constant 0 : index
    %c0_13 = arith.constant 0 : index
    %22 = vector.load %arg4[%c0_12, %c0_13] : memref<128x128xf32, #tpu.memory_space<vmem>>, vector<128x128xf32>
    %cst_14 = arith.constant dense<0.000000e+00> : vector<128x128xf32>
    %23 = tpu.matmul %22, %21, %cst_14 {dimension_numbers = #tpu.dot_dimension_numbers<[1], [0], [0], [1], [0, 0, 1, 1], [], []>} : vector<128x128xf32>, vector<128x128xf32>, vector<128x128xf32> -> vector<128x128xf32>
    %24 = vector.extract_strided_slice %0 {offsets = [0, 2], sizes = [128, 1], strides = [1, 1]} : vector<128x8xf32> to vector<128x1xf32>
    %25 = vector.broadcast %24 : vector<128x1xf32> to vector<128x128xf32>
    %26 = arith.addf %23, %25 : vector<128x128xf32>
    %cst_15 = arith.constant 0.000000e+00 : f32
    %27 = vector.broadcast %cst_15 : f32 to vector<128x128xf32>
    %28 = arith.cmpf oge, %26, %27 : vector<128x128xf32>
    %cst_16 = arith.constant 0.00999999977 : f32
    %29 = vector.broadcast %cst_16 : f32 to vector<128x128xf32>
    %30 = arith.mulf %29, %26 : vector<128x128xf32>
    %31 = arith.select %28, %26, %30 : vector<128x128xi1>, vector<128x128xf32>
    %c0_17 = arith.constant 0 : index
    %c0_18 = arith.constant 0 : index
    %32 = vector.load %arg5[%c0_17, %c0_18] : memref<128x128xf32, #tpu.memory_space<vmem>>, vector<128x128xf32>
    %cst_19 = arith.constant dense<0.000000e+00> : vector<128x128xf32>
    %33 = tpu.matmul %32, %31, %cst_19 {dimension_numbers = #tpu.dot_dimension_numbers<[1], [0], [0], [1], [0, 0, 1, 1], [], []>} : vector<128x128xf32>, vector<128x128xf32>, vector<128x128xf32> -> vector<128x128xf32>
    %34 = vector.extract_strided_slice %0 {offsets = [0, 3], sizes = [128, 1], strides = [1, 1]} : vector<128x8xf32> to vector<128x1xf32>
    %35 = vector.broadcast %34 : vector<128x1xf32> to vector<128x128xf32>
    %36 = arith.addf %33, %35 : vector<128x128xf32>
    %cst_20 = arith.constant 0.000000e+00 : f32
    %37 = vector.broadcast %cst_20 : f32 to vector<128x128xf32>
    %38 = arith.cmpf oge, %36, %37 : vector<128x128xf32>
    %cst_21 = arith.constant 0.00999999977 : f32
    %39 = vector.broadcast %cst_21 : f32 to vector<128x128xf32>
    %40 = arith.mulf %39, %36 : vector<128x128xf32>
    %41 = arith.select %38, %36, %40 : vector<128x128xi1>, vector<128x128xf32>
    %c0_22 = arith.constant 0 : index
    %c0_23 = arith.constant 0 : index
    %42 = vector.load %arg6[%c0_22, %c0_23] : memref<128x128xf32, #tpu.memory_space<vmem>>, vector<128x128xf32>
    %cst_24 = arith.constant dense<0.000000e+00> : vector<128x128xf32>
    %43 = tpu.matmul %42, %41, %cst_24 {dimension_numbers = #tpu.dot_dimension_numbers<[1], [0], [0], [1], [0, 0, 1, 1], [], []>} : vector<128x128xf32>, vector<128x128xf32>, vector<128x128xf32> -> vector<128x128xf32>
    %44 = vector.extract_strided_slice %0 {offsets = [0, 4], sizes = [128, 1], strides = [1, 1]} : vector<128x8xf32> to vector<128x1xf32>
    %45 = vector.broadcast %44 : vector<128x1xf32> to vector<128x128xf32>
    %46 = arith.addf %43, %45 : vector<128x128xf32>
    %cst_25 = arith.constant 0.000000e+00 : f32
    %47 = vector.broadcast %cst_25 : f32 to vector<128x128xf32>
    %48 = arith.cmpf oge, %46, %47 : vector<128x128xf32>
    %cst_26 = arith.constant 0.00999999977 : f32
    %49 = vector.broadcast %cst_26 : f32 to vector<128x128xf32>
    %50 = arith.mulf %49, %46 : vector<128x128xf32>
    %51 = arith.select %48, %46, %50 : vector<128x128xi1>, vector<128x128xf32>
    %c0_27 = arith.constant 0 : index
    %c0_28 = arith.constant 0 : index
    %52 = vector.load %arg7[%c0_27, %c0_28] : memref<2x128xf32, #tpu.memory_space<vmem>>, vector<2x128xf32>
    %cst_29 = arith.constant dense<0.000000e+00> : vector<2x128xf32>
    %53 = tpu.matmul %52, %51, %cst_29 {dimension_numbers = #tpu.dot_dimension_numbers<[1], [0], [0], [1], [0, 0, 1, 1], [], []>} : vector<2x128xf32>, vector<128x128xf32>, vector<2x128xf32> -> vector<2x128xf32>
    %54 = vector.extract_strided_slice %0 {offsets = [0, 5], sizes = [2, 1], strides = [1, 1]} : vector<128x8xf32> to vector<2x1xf32>
    %55 = vector.broadcast %54 : vector<2x1xf32> to vector<2x128xf32>
    %56 = arith.addf %53, %55 : vector<2x128xf32>
    %cst_30 = arith.constant 0.000000e+00 : f32
    %cst_31 = arith.constant 6.000000e+00 : f32
    %57 = vector.broadcast %cst_30 : f32 to vector<2x128xf32>
    %58 = arith.maximumf %57, %56 : vector<2x128xf32>
    %59 = vector.broadcast %cst_31 : f32 to vector<2x128xf32>
    %60 = arith.minimumf %59, %58 : vector<2x128xf32>
    %cst_32 = arith.constant 1.666700e-01 : f32
    %61 = vector.broadcast %cst_32 : f32 to vector<2x128xf32>
    %62 = arith.mulf %60, %61 : vector<2x128xf32>
    %c0_33 = arith.constant 0 : index
    %c0_34 = arith.constant 0 : index
    %63 = vector.load %arg9[%c0_33, %c0_34] : memref<2x128xf32, #tpu.memory_space<vmem>>, vector<2x128xf32>
    tpu.vector_store %arg9[%c0_33, %c0_34], %62 {strides = array<i32>} : memref<2x128xf32, #tpu.memory_space<vmem>>, vector<2x128xf32>,
    return
  }
  func.func @transform_0(%arg0: i32) -> (i32, i32) {
    %c0_i32 = arith.constant 0 : i32
    %c0_i32_0 = arith.constant 0 : i32
    return %c0_i32, %arg0 : i32, i32
  }
  func.func @transform_1(%arg0: i32) -> (i32, i32) {
    %c0_i32 = arith.constant 0 : i32
    %c0_i32_0 = arith.constant 0 : i32
    %c0_i32_1 = arith.constant 0 : i32
    return %c0_i32, %c0_i32_0 : i32, i32
  }
  func.func @transform_2(%arg0: i32) -> (i32, i32) {
    %c0_i32 = arith.constant 0 : i32
    %c0_i32_0 = arith.constant 0 : i32
    %c0_i32_1 = arith.constant 0 : i32
    return %c0_i32, %c0_i32_0 : i32, i32
  }
  func.func @transform_3(%arg0: i32) -> (i32, i32) {
    %c0_i32 = arith.constant 0 : i32
    %c0_i32_0 = arith.constant 0 : i32
    %c0_i32_1 = arith.constant 0 : i32
    return %c0_i32, %c0_i32_0 : i32, i32
  }
  func.func @transform_4(%arg0: i32) -> (i32, i32) {
    %c0_i32 = arith.constant 0 : i32
    %c0_i32_0 = arith.constant 0 : i32
    %c0_i32_1 = arith.constant 0 : i32
    return %c0_i32, %c0_i32_0 : i32, i32
  }
  func.func @transform_5(%arg0: i32) -> (i32, i32) {
    %c0_i32 = arith.constant 0 : i32
    %c0_i32_0 = arith.constant 0 : i32
    %c0_i32_1 = arith.constant 0 : i32
    return %c0_i32, %c0_i32_0 : i32, i32
  }
  func.func @transform_6(%arg0: i32) -> (i32, i32) {
    %c0_i32 = arith.constant 0 : i32
    %c0_i32_0 = arith.constant 0 : i32
    %c0_i32_1 = arith.constant 0 : i32
    return %c0_i32, %c0_i32_0 : i32, i32
  }
  func.func @transform_7(%arg0: i32) -> (i32, i32) {
    %c0_i32 = arith.constant 0 : i32
    %c0_i32_0 = arith.constant 0 : i32
    %c0_i32_1 = arith.constant 0 : i32
    return %c0_i32, %c0_i32_0 : i32, i32
  }
  func.func @transform_8(%arg0: i32) -> (i32, i32) {
    %c0_i32 = arith.constant 0 : i32
    %c0_i32_0 = arith.constant 0 : i32
    return %c0_i32, %arg0 : i32, i32
  }
}

</mosaic_0001>

<bundles_post_ra>
// kernel: tpu_custom_call.1
= control target key start
LH: loop header
LB: loop body
LE: loop exit
PB: predicated region body
PF: predicated region fallthrough
CT: control target
= control target key end

     0   :  { %13 = vsyncpa [#allocation3], 0  ;;  %s2798_s0 = inlined_call_operand.vmem [shape: f32[5,128], index: 0, kind: input, shape index: {}]   ;;  %s2799_s1 = inlined_call_operand.vmem [shape: f32[128,5], index: 1, kind: input, shape index: {}]   ;;  %s2800_s2 = inlined_call_operand.vmem [shape: f32[128,128], index: 2, kind: input, shape index: {}]   ;;  %s2801_s3 = inlined_call_operand.vmem [shape: f32[128,128], index: 3, kind: input, shape index: {}]   ;;  %s2802_s4 = inlined_call_operand.hbm [shape: f32[128,128], index: 4, kind: input, shape index: {}]   ;;  %s2803_s5 = inlined_call_operand.hbm [shape: f32[128,128], index: 5, kind: input, shape index: {}]   ;;  %s2804_s6 = inlined_call_operand.vmem [shape: f32[2,128], index: 6, kind: input, shape index: {}]   ;;  %s2805_s7 = inlined_call_operand.vmem [shape: f32[128,8], index: 7, kind: input, shape index: {}]   ;;  %s2806_s8 = inlined_call_operand.hbm [shape: f32[2,128], index: 8, kind: output, shape index: {}]  }
   0x1   :  { %14 = vsyncpa [#allocation6], 0 }
   0x2   :  { %15 = vsyncpa [#allocation4], 0  ;;  %s2333_s27 = smov [#allocation2]   ;;  %s2261_s9 = scalar_lea.hbm %s2802_s4, 2048 }
   0x3   :  { %s29_s28 = sshll.u32 %s2333_s27, 4  ;;  %p2262_p0 = scmp.ne.s32.totalorder %s2802_s4, %s2261_s9  ;;  %s30_s28 = int_to_ptr.vmem [resolvable:$true] %s29_s28 }
   0x4   :  { %p2265_p1 = scmp.lt.u32.totalorder %s2261_s9, %s2802_s4 }
   0x6   :  { %p2267_p2 = pnand %p2265_p1, %p2262_p0 }
   0x8   :  { %2270 = shalt.err (!%p2267_p2)
}
   0x9   :  { %s2271_s14 = scalar_lea.vmem %s30_s28, 2048  ;;  %p2276_p4 = scmp.lt.s32.totalorder %s30_s28, %s30_s28 }
   0xa   :  { %p2272_p3 = scmp.ne.s32.totalorder %s30_s28, %s2271_s14  ;;  %p2277_p5 = scmp.lt.s32.totalorder %s2271_s14, %s2271_s14 }
   0xc   :  { %p2278_p6 = por %p2277_p5, %p2276_p4 }
   0xe   :  { %p2279_p7 = pnand %p2278_p6, %p2272_p3 }
  0x10   :  { %2282 = shalt.err (!%p2279_p7)
}
  0x11   :  { %s2334_s15 = smov 128   ;;  %s2335_s16 = smov 8  }
  0x12   :  { %35 = dma.hbm_to_vmem [thread:$0]  %s2802_s4, 2048, %s30_s28, [#allocation3], %s2334_s15, %s2334_s15, %s2335_s16  }
  0x13   :  { %s2336_s19 = smov [#allocation5]   ;;  %s2283_s23 = scalar_lea.hbm %s2803_s5, 2048 }
  0x14   :  { %s41_s20 = sshll.u32 %s2336_s19, 4  ;;  %p2284_p8 = scmp.ne.s32.totalorder %s2803_s5, %s2283_s23  ;;  %s42_s20 = int_to_ptr.vmem [resolvable:$true] %s41_s20 }
  0x15   :  { %p2287_p9 = scmp.lt.u32.totalorder %s2283_s23, %s2803_s5 }
  0x17   :  { %p2289_p10 = pnand %p2287_p9, %p2284_p8 }
  0x19   :  { %2292 = shalt.err (!%p2289_p10)
}
  0x1a   :  { %s2293_s29 = scalar_lea.vmem %s42_s20, 2048  ;;  %p2298_p12 = scmp.lt.s32.totalorder %s42_s20, %s42_s20 }
  0x1b   :  { %p2294_p11 = scmp.ne.s32.totalorder %s42_s20, %s2293_s29  ;;  %p2299_p13 = scmp.lt.s32.totalorder %s2293_s29, %s2293_s29 }
  0x1d   :  { %p2300_p0 = por %p2299_p13, %p2298_p12 }
  0x1f   :  { %p2301_p1 = pnand %p2300_p0, %p2294_p11 }
  0x21   :  { %2304 = shalt.err (!%p2301_p1)
}
  0x22   :  { %47 = dma.hbm_to_vmem [thread:$0]  %s2803_s5, 2048, %s42_s20, [#allocation6], %s2334_s15, %s2334_s15, %s2335_s16  }
  0x23   :  { %2327 = dma.done.wait [#allocation3], 2048  }
  0x24   :  { %2328 = vsyncadd [#allocation3], 4294965248 }
  0x25   :  { %2329 = dma.done.wait [#allocation6], 2048  }
  0x26   :  { %2330 = vsyncadd [#allocation6], 4294965248  ;;  %v2337_v0 = vmov 0   ;;  %vm220_vm0 = vcmask 1044480   ;;  %vm171_vm1 = vcmask 39936   ;;  %v75_v2 = vld [vmem:[%s2799_s1] sm:$0xff] }
  0x27   :  { %2234 = vset.pattern.permute.xlu0 %v2337_v0  ;;  %2235 = vset.pattern.permute.xlu1 %v2337_v0  ;;  %v74_v1 = vld [vmem:[%s2798_s0] sm:$0x1f]  ;;  %v76_v3 = vld [vmem:[%s2799_s1 + $0x8] sm:$0xff]  ;;  %v77_v4 = vld [vmem:[%s2799_s1 + $0x10] sm:$0xff]  ;;  %v2338_v35 = vmov 1   ;;  %s2346_s12 = smov [#allocation7]  }
  0x28   :  { %1783 = vmatprep.subr.msk.mxu0 %vm220_vm0, %v74_v1  ;;  %1785 = vmatprep.mubr.msk.f32.mxu0 %vm171_vm1, %v75_v2  ;;  %v78_v5 = vld [vmem:[%s2799_s1 + $0x18] sm:$0xff]  ;;  %v79_v6 = vld [vmem:[%s2799_s1 + $0x20] sm:$0xff]  ;;  %v2446_v8 = vld [vmem:[%s2805_s7 + $0x10] sm:$0xff]  ;;  %s1594_s13 = sshll.u32 %s2346_s12, 4  ;;  %s1595_s13 = int_to_ptr.vmem [resolvable:$true] %s1594_s13 }
  0x29   :  { %1784 = vmatpush3.msk.msra.mxu0 %vm220_vm0, %v74_v1  ;;  %v2440_v7 = vld [vmem:[%s2805_s7] sm:$0xff]  ;;  %103 = vperm.xlu1 %2235, %v2446_v8   ;;  %v2453_v9 = vld [vmem:[%s2805_s7 + $0x8] sm:$0xff]  ;;  %v2462_v11 = vld [vmem:[%s2805_s7 + $0x18] sm:$0xff]  ;;  %s2305_s5 = scalar_lea.vmem %s1595_s13, 32  ;;  %p2310_p3 = scmp.lt.s32.totalorder %s1595_s13, %s1595_s13 }
  0x2a   :  { %1786 = vmatmul.mubr.msk.f32.vlgmr.msra.gmra.mrb[0].mxu0 %vm171_vm1, %v76_v3  ;;  %93 = vperm.xlu0 %2234, %v2440_v7   ;;  %v80_v10 = vld [vmem:[%s2799_s1 + $0x28] sm:$0xff]  ;;  %v81_v12 = vld [vmem:[%s2799_s1 + $0x30] sm:$0xff]  ;;  %v2473_v13 = vld [vmem:[%s2805_s7 + $0x20] sm:$0xff]  ;;  %p2306_p2 = scmp.ne.s32.totalorder %s1595_s13, %s2305_s5  ;;  %p2311_p4 = scmp.lt.s32.totalorder %s2305_s5, %s2305_s5 }
  0x2b   :  { %1788 = vmatprep.mubr.msk.f32.mxu0 %vm171_vm1, %v77_v4  ;;  %v82_v14 = vld [vmem:[%s2799_s1 + $0x38] sm:$0xff]  ;;  %v2482_v15 = vld [vmem:[%s2805_s7 + $0x28] sm:$0xff]  ;;  %v83_v16 = vld [vmem:[%s2799_s1 + $0x40] sm:$0xff] }
  0x2c   :  { %v2493_v17 = vld [vmem:[%s2805_s7 + $0x30] sm:$0xff]  ;;  %v84_v18 = vld [vmem:[%s2799_s1 + $0x48] sm:$0xff]  ;;  %v2502_v19 = vld [vmem:[%s2805_s7 + $0x38] sm:$0xff]  ;;  %p2312_p5 = por %p2311_p4, %p2310_p3 }
  0x2d   :  { %108 = vperm.xlu1 %2235, %v2462_v11   ;;  %v85_v20 = vld [vmem:[%s2799_s1 + $0x50] sm:$0xff]  ;;  %v2513_v21 = vld [vmem:[%s2805_s7 + $0x40] sm:$0xff]  ;;  %v86_v22 = vld [vmem:[%s2799_s1 + $0x58] sm:$0xff] }
  0x2e   :  { %1789 = vmatmul.mubr.msk.f32.gmra.mrb[2].mxu0 %vm171_vm1, %v78_v5  ;;  %98 = vperm.xlu0 %2234, %v2453_v9   ;;  %v2522_v23 = vld [vmem:[%s2805_s7 + $0x48] sm:$0xff]  ;;  %v87_v24 = vld [vmem:[%s2799_s1 + $0x60] sm:$0xff]  ;;  %v2533_v25 = vld [vmem:[%s2805_s7 + $0x50] sm:$0xff]  ;;  %p2313_p6 = pnand %p2312_p5, %p2306_p2 }
  0x2f   :  { %1791 = vmatprep.mubr.msk.f32.mxu0 %vm171_vm1, %v79_v6  ;;  %v88_v26 = vld [vmem:[%s2799_s1 + $0x68] sm:$0xff]  ;;  %v2542_v27 = vld [vmem:[%s2805_s7 + $0x58] sm:$0xff]  ;;  %v89_v28 = vld [vmem:[%s2799_s1 + $0x70] sm:$0xff] }
  0x30   :  { %v2553_v29 = vld [vmem:[%s2805_s7 + $0x60] sm:$0xff]  ;;  %v90_v30 = vld [vmem:[%s2799_s1 + $0x78] sm:$0xff]  ;;  %v2562_v31 = vld [vmem:[%s2805_s7 + $0x68] sm:$0xff] }
  0x31   :  { %118 = vperm.xlu1 %2235, %v2482_v15   ;;  %v2570_v32 = vld [vmem:[%s2805_s7 + $0x70] sm:$0xff]  ;;  %v2575_v33 = vld [vmem:[%s2805_s7 + $0x78] sm:$0xff]  ;;  %v417_v34 = vld [vmem:[%s2800_s2] sm:$0xff] }
  0x32   :  { %1792 = vmatmul.mubr.msk.f32.gmra.mrb[4].mxu0 %vm171_vm1, %v80_v10  ;;  %113 = vperm.xlu0 %2234, %v2473_v13  }
  0x33   :  { %1794 = vmatprep.mubr.msk.f32.mxu0 %vm171_vm1, %v81_v12  ;;  %1841 = vmatprep.mubr.f32.mxu1 %v417_v34 }
  0x35   :  { %128 = vperm.xlu1 %2235, %v2502_v19  }
  0x36   :  { %1795 = vmatmul.mubr.msk.f32.gmra.mrb[6].mxu0 %vm171_vm1, %v82_v14  ;;  %123 = vperm.xlu0 %2234, %v2493_v17  }
  0x37   :  { %1797 = vmatprep.mubr.msk.f32.mxu0 %vm171_vm1, %v83_v16 }
  0x39   :  { %138 = vperm.xlu1 %2235, %v2522_v23  }
  0x3a   :  { %1798 = vmatmul.mubr.msk.f32.gmra.mrb[8].mxu0 %vm171_vm1, %v84_v18  ;;  %133 = vperm.xlu0 %2234, %v2513_v21  }
  0x3b   :  { %1800 = vmatprep.mubr.msk.f32.mxu0 %vm171_vm1, %v85_v20 }
  0x3d   :  { %148 = vperm.xlu1 %2235, %v2542_v27  }
  0x3e   :  { %1801 = vmatmul.mubr.msk.f32.gmra.mrb[10].mxu0 %vm171_vm1, %v86_v22  ;;  %143 = vperm.xlu0 %2234, %v2533_v25  }
  0x3f   :  { %1803 = vmatprep.mubr.msk.f32.mxu0 %vm171_vm1, %v87_v24 }
  0x41   :  { %158 = vperm.xlu1 %2235, %v2562_v31  }
  0x42   :  { %1804 = vmatmul.mubr.msk.f32.gmra.mrb[12].mxu0 %vm171_vm1, %v88_v26  ;;  %153 = vperm.xlu0 %2234, %v2553_v29  }
  0x43   :  { %1806 = vmatprep.mubr.msk.f32.mxu0 %vm171_vm1, %v89_v28 }
  0x45   :  { %168 = vperm.xlu1 %2235, %v2575_v33  }
  0x46   :  { %1807 = vmatmul.mubr.msk.f32.gmra.mrb[14].mxu0 %vm171_vm1, %v90_v30  ;;  %163 = vperm.xlu0 %2234, %v2570_v32  }
  0x49   :  { %2237 = vset.pattern.permute.xlu1 %v2338_v35 }
  0x4a   :  { %2236 = vset.pattern.permute.xlu0 %v2338_v35  ;;  %438 = vperm.xlu1 %2237, %v2453_v9  }
  0x4b   :  { %434 = vperm.xlu0 %2236, %v2440_v7  }
  0x4e   :  { %442 = vperm.xlu1 %2237, %v2446_v8  }
  0x4f   :  { %446 = vperm.xlu0 %2236, %v2462_v11  }
  0x52   :  { %450 = vperm.xlu1 %2237, %v2473_v13  }
  0x53   :  { %454 = vperm.xlu0 %2236, %v2482_v15  }
  0x56   :  { %458 = vperm.xlu1 %2237, %v2493_v17  }
  0x57   :  { %462 = vperm.xlu0 %2236, %v2502_v19  }
  0x5a   :  { %466 = vperm.xlu1 %2237, %v2513_v21  }
  0x5b   :  { %470 = vperm.xlu0 %2236, %v2522_v23  }
  0x5e   :  { %474 = vperm.xlu1 %2237, %v2533_v25  }
  0x5f   :  { %478 = vperm.xlu0 %2236, %v2542_v27  }
  0x62   :  { %482 = vperm.xlu1 %2237, %v2553_v29  }
  0x63   :  { %486 = vperm.xlu0 %2236, %v2562_v31  }
  0x66   :  { %490 = vperm.xlu1 %2237, %v2570_v32  }
  0x67   :  { %494 = vperm.xlu0 %2236, %v2575_v33  }
  0xa8   :  { %v104_v36 = vpop.permute.xlu1 %103 }
  0xa9   :  { %v94_v37 = vpop.permute.xlu0 %93 }
  0xac   :  { %v109_v38 = vpop.permute.xlu1 %108 }
  0xad   :  { %v99_v39 = vpop.permute.xlu0 %98 }
  0xb0   :  { %v119_v40 = vpop.permute.xlu1 %118 }
  0xb1   :  { %v114_v41 = vpop.permute.xlu0 %113 }
  0xb4   :  { %v129_v47 = vpop.permute.xlu1 %128 }
  0xb5   :  { %v124_v50 = vpop.permute.xlu0 %123 }
  0xb8   :  { %v139_v63 = vpop.permute.xlu1 %138 }
  0xb9   :  { %v134_v2 = vpop.permute.xlu0 %133 }
  0xbc   :  { %v149_v24 = vpop.permute.xlu1 %148 }
  0xbd   :  { %v144_v30 = vpop.permute.xlu0 %143 }
  0xfd   :  { %v1787_v42 = vpop.f32.mrb[0].mxu0 }
  0xfe   :  { %v296_v43 = vadd.f32 %v1787_v42, %v99_v39  ;;  %v290_v44 = vpop.f32.mrb[1].mxu0 }
  0xff   :  { %v291_v45 = vadd.f32 %v290_v44, %v94_v37 }
 0x100   :  { %v386_v46 = vmul.f32 0.01, %v296_v43  ;;  %vm370_vm2 = vcmp.ge.f32.partialorder %v296_v43, 0.0 }
 0x101   :  { %v385_v48 = vmul.f32 0.01, %v291_v45  ;;  %v1790_v49 = vpop.f32.mrb[2].mxu0  ;;  %vm369_vm3 = vcmp.ge.f32.partialorder %v291_v45, 0.0 }
 0x102   :  { %v306_v51 = vadd.f32 %v1790_v49, %v109_v38  ;;  %v300_v52 = vpop.f32.mrb[3].mxu0  ;;  %v402_v53 = vsel %vm370_vm2, %v296_v43, %v386_v46  ;;  %v159_v46 = vpop.permute.xlu1 %158 }
 0x103   :  { %v301_v54 = vadd.f32 %v300_v52, %v104_v36  ;;  %v401_v55 = vsel %vm369_vm3, %v291_v45, %v385_v48  ;;  %v154_v49 = vpop.permute.xlu0 %153 }
 0x104   :  { %vm372_vm4 = vcmp.ge.f32.partialorder %v306_v51, 0.0  ;;  %v388_v56 = vmul.f32 0.01, %v306_v51  ;;  %v2068_v57 = vpack.c.bf16 %v402_v53, %v401_v55 }
 0x105   :  { %vm371_vm5 = vcmp.ge.f32.partialorder %v301_v54, 0.0  ;;  %v387_v58 = vmul.f32 0.01, %v301_v54  ;;  %v1793_v59 = vpop.f32.mrb[4].mxu0 }
 0x106   :  { %v316_v60 = vadd.f32 %v1793_v59, %v119_v40  ;;  %v310_v61 = vpop.f32.mrb[5].mxu0  ;;  %2069 = vmatprep.subr.bf16.mxu1 %v2068_v57  ;;  %v404_v62 = vsel %vm372_vm4, %v306_v51, %v388_v56 }
 0x107   :  { %v311_v0 = vadd.f32 %v310_v61, %v114_v41  ;;  %2071 = vmatpush3.bf16.msra.mxu1 %v2068_v57  ;;  %v403_v1 = vsel %vm371_vm5, %v301_v54, %v387_v58  ;;  %v169_v61 = vpop.permute.xlu1 %168 }
 0x108   :  { %vm374_vm6 = vcmp.ge.f32.partialorder %v316_v60, 0.0  ;;  %v390_v3 = vmul.f32 0.01, %v316_v60  ;;  %v2072_v4 = vpack.c.bf16 %v404_v62, %v403_v1 }
 0x109   :  { %vm373_vm7 = vcmp.ge.f32.partialorder %v311_v0, 0.0  ;;  %v389_v5 = vmul.f32 0.01, %v311_v0  ;;  %v1796_v6 = vpop.f32.mrb[6].mxu0 }
 0x10a   :  { %v326_v10 = vadd.f32 %v1796_v6, %v129_v47  ;;  %v320_v12 = vpop.f32.mrb[7].mxu0  ;;  %2073 = vmatprep.subr.bf16.mxu1 %v2072_v4  ;;  %v406_v14 = vsel %vm374_vm6, %v316_v60, %v390_v3 }
 0x10b   :  { %v321_v16 = vadd.f32 %v320_v12, %v124_v50  ;;  %2075 = vmatpush3.bf16.msra.mxu1 %v2072_v4  ;;  %v405_v18 = vsel %vm373_vm7, %v311_v0, %v389_v5  ;;  %v164_v0 = vpop.permute.xlu0 %163 }
 0x10c   :  { %vm376_vm8 = vcmp.ge.f32.partialorder %v326_v10, 0.0  ;;  %v392_v20 = vmul.f32 0.01, %v326_v10  ;;  %v2076_v22 = vpack.c.bf16 %v406_v14, %v405_v18 }
 0x10d   :  { %vm375_vm9 = vcmp.ge.f32.partialorder %v321_v16, 0.0  ;;  %v391_v26 = vmul.f32 0.01, %v321_v16  ;;  %v1799_v28 = vpop.f32.mrb[8].mxu0 }
 0x10e   :  { %v336_v34 = vadd.f32 %v1799_v28, %v139_v63  ;;  %v330_v35 = vpop.f32.mrb[9].mxu0  ;;  %2077 = vmatprep.subr.bf16.mxu1 %v2076_v22  ;;  %v408_v36 = vsel %vm376_vm8, %v326_v10, %v392_v20  ;;  %v418_v20 = vld [vmem:[%s2800_s2 + $0x8] sm:$0xff] }
 0x10f   :  { %v331_v37 = vadd.f32 %v330_v35, %v134_v2  ;;  %2079 = vmatpush3.bf16.msra.mxu1 %v2076_v22  ;;  %v407_v38 = vsel %vm375_vm9, %v321_v16, %v391_v26  ;;  %v419_v22 = vld [vmem:[%s2800_s2 + $0x10] sm:$0xff]  ;;  %v421_v26 = vld [vmem:[%s2800_s2 + $0x20] sm:$0xff]  ;;  %v422_v28 = vld [vmem:[%s2800_s2 + $0x28] sm:$0xff] }
 0x110   :  { %vm378_vm10 = vcmp.ge.f32.partialorder %v336_v34, 0.0  ;;  %v394_v39 = vmul.f32 0.01, %v336_v34  ;;  %v2080_v40 = vpack.c.bf16 %v408_v36, %v407_v38  ;;  %v425_v35 = vld [vmem:[%s2800_s2 + $0x40] sm:$0xff]  ;;  %v426_v36 = vld [vmem:[%s2800_s2 + $0x48] sm:$0xff]  ;;  %v428_v38 = vld [vmem:[%s2800_s2 + $0x58] sm:$0xff] }
 0x111   :  { %vm377_vm11 = vcmp.ge.f32.partialorder %v331_v37, 0.0  ;;  %v393_v41 = vmul.f32 0.01, %v331_v37  ;;  %v1802_v42 = vpop.f32.mrb[10].mxu0 }
 0x112   :  { %v346_v43 = vadd.f32 %v1802_v42, %v149_v24  ;;  %v340_v44 = vpop.f32.mrb[11].mxu0  ;;  %2081 = vmatprep.subr.bf16.mxu1 %v2080_v40  ;;  %v410_v45 = vsel %vm378_vm10, %v336_v34, %v394_v39  ;;  %v420_v24 = vld [vmem:[%s2800_s2 + $0x18] sm:$0xff]  ;;  %v429_v39 = vld [vmem:[%s2800_s2 + $0x60] sm:$0xff] }
 0x113   :  { %v341_v47 = vadd.f32 %v340_v44, %v144_v30  ;;  %2083 = vmatpush3.bf16.msra.mxu1 %v2080_v40  ;;  %v409_v48 = vsel %vm377_vm11, %v331_v37, %v393_v41  ;;  %v423_v30 = vld [vmem:[%s2800_s2 + $0x30] sm:$0xff]  ;;  %v424_v34 = vld [vmem:[%s2800_s2 + $0x38] sm:$0xff]  ;;  %v430_v40 = vld [vmem:[%s2800_s2 + $0x68] sm:$0xff]  ;;  %v2339_v44 = vmov 2  }
 0x114   :  { %vm380_vm12 = vcmp.ge.f32.partialorder %v346_v43, 0.0  ;;  %v396_v50 = vmul.f32 0.01, %v346_v43  ;;  %v2084_v51 = vpack.c.bf16 %v410_v45, %v409_v48  ;;  %v427_v37 = vld [vmem:[%s2800_s2 + $0x50] sm:$0xff]  ;;  %v432_v42 = vld [vmem:[%s2800_s2 + $0x78] sm:$0xff]  ;;  %2238 = vset.pattern.permute.xlu1 %v2339_v44  ;;  %2239 = vset.pattern.permute.xlu0 %v2339_v44  ;;  %v435_v45 = vpop.permute.xlu0 %434 }
 0x115   :  { %vm379_vm13 = vcmp.ge.f32.partialorder %v341_v47, 0.0  ;;  %v395_v52 = vmul.f32 0.01, %v341_v47  ;;  %v1805_v53 = vpop.f32.mrb[12].mxu0  ;;  %v431_v41 = vld [vmem:[%s2800_s2 + $0x70] sm:$0xff]  ;;  %707 = vperm.xlu1 %2238, %v2440_v7   ;;  %711 = vperm.xlu0 %2239, %v2453_v9  }
 0x116   :  { %v356_v54 = vadd.f32 %v1805_v53, %v159_v46  ;;  %v350_v55 = vpop.f32.mrb[13].mxu0  ;;  %2085 = vmatprep.subr.bf16.mxu1 %v2084_v51  ;;  %v412_v56 = vsel %vm380_vm12, %v346_v43, %v396_v50  ;;  %v690_v43 = vld [vmem:[%s2801_s3] sm:$0xff]  ;;  %v439_v46 = vpop.permute.xlu1 %438 }
 0x117   :  { %v351_v57 = vadd.f32 %v350_v55, %v154_v49  ;;  %2087 = vmatpush3.bf16.msra.mxu1 %v2084_v51  ;;  %v411_v58 = vsel %vm379_vm13, %v341_v47, %v395_v52  ;;  %1897 = vmatprep.mubr.f32.mxu0 %v690_v43 }
 0x118   :  { %vm382_vm14 = vcmp.ge.f32.partialorder %v356_v54, 0.0  ;;  %v398_v59 = vmul.f32 0.01, %v356_v54  ;;  %v2088_v60 = vpack.c.bf16 %v412_v56, %v411_v58  ;;  %v447_v47 = vpop.permute.xlu0 %446 }
 0x119   :  { %vm381_vm15 = vcmp.ge.f32.partialorder %v351_v57, 0.0  ;;  %v397_v62 = vmul.f32 0.01, %v351_v57  ;;  %v1808_v63 = vpop.f32.mrb[14].mxu0  ;;  %715 = vperm.xlu1 %2238, %v2446_v8   ;;  %723 = vperm.xlu0 %2239, %v2473_v13  }
 0x11a   :  { %v366_v1 = vadd.f32 %v1808_v63, %v169_v61  ;;  %v360_v2 = vpop.f32.mrb[15].mxu0  ;;  %2089 = vmatprep.subr.bf16.mxu1 %v2088_v60  ;;  %v414_v3 = vsel %vm382_vm14, %v356_v54, %v398_v59  ;;  %v443_v48 = vpop.permute.xlu1 %442 }
 0x11b   :  { %v361_v4 = vadd.f32 %v360_v2, %v164_v0  ;;  %2091 = vmatpush3.bf16.msra.mxu1 %v2088_v60  ;;  %v413_v5 = vsel %vm381_vm15, %v351_v57, %v397_v62 }
 0x11c   :  { %vm384_vm0 = vcmp.ge.f32.partialorder %v366_v1, 0.0  ;;  %v400_v6 = vmul.f32 0.01, %v366_v1  ;;  %v2092_v10 = vpack.c.bf16 %v414_v3, %v413_v5  ;;  %v455_v49 = vpop.permute.xlu0 %454 }
 0x11d   :  { %vm383_vm1 = vcmp.ge.f32.partialorder %v361_v4, 0.0  ;;  %v399_v12 = vmul.f32 0.01, %v361_v4  ;;  %719 = vperm.xlu1 %2238, %v2462_v11   ;;  %731 = vperm.xlu0 %2239, %v2493_v17  }
 0x11e   :  { %2093 = vmatprep.subr.bf16.mxu1 %v2092_v10  ;;  %v416_v14 = vsel %vm384_vm0, %v366_v1, %v400_v6  ;;  %v451_v50 = vpop.permute.xlu1 %450 }
 0x11f   :  { %2095 = vmatpush3.bf16.msra.mxu1 %v2092_v10  ;;  %v415_v16 = vsel %vm383_vm1, %v361_v4, %v399_v12 }
 0x120   :  { %v2096_v18 = vpack.c.bf16 %v416_v14, %v415_v16  ;;  %v463_v56 = vpop.permute.xlu0 %462 }
 0x121   :  { %727 = vperm.xlu1 %2238, %v2482_v15   ;;  %739 = vperm.xlu0 %2239, %v2513_v21  }
 0x122   :  { %2097 = vmatprep.subr.bf16.mxu1 %v2096_v18  ;;  %v459_v59 = vpop.permute.xlu1 %458 }
 0x123   :  { %2099 = vmatpush3.bf16.msra.mxu1 %v2096_v18 }
 0x124   :  { %v471_v12 = vpop.permute.xlu0 %470 }
 0x125   :  { %735 = vperm.xlu1 %2238, %v2502_v19   ;;  %747 = vperm.xlu0 %2239, %v2533_v25  }
 0x126   :  { %1842 = vmatmul.mubr.f32.vlgmr.msra.gmra.mrb[0].mxu1 %v418_v20  ;;  %v467_v18 = vpop.permute.xlu1 %466 }
 0x127   :  { %1844 = vmatprep.mubr.f32.mxu1 %v419_v22 }
 0x129   :  { %743 = vperm.xlu1 %2238, %v2522_v23   ;;  %755 = vperm.xlu0 %2239, %v2553_v29  }
 0x12a   :  { %1845 = vmatmul.mubr.f32.gmra.mrb[2].mxu1 %v420_v24 }
 0x12b   :  { %1847 = vmatprep.mubr.f32.mxu1 %v421_v26 }
 0x12d   :  { %751 = vperm.xlu1 %2238, %v2542_v27   ;;  %763 = vperm.xlu0 %2239, %v2570_v32  }
 0x12e   :  { %1848 = vmatmul.mubr.f32.gmra.mrb[4].mxu1 %v422_v28 }
 0x12f   :  { %1850 = vmatprep.mubr.f32.mxu1 %v423_v30 }
 0x131   :  { %759 = vperm.xlu1 %2238, %v2562_v31  }
 0x132   :  { %1851 = vmatmul.mubr.f32.gmra.mrb[6].mxu1 %v424_v34 }
 0x133   :  { %1853 = vmatprep.mubr.f32.mxu1 %v425_v35 }
 0x135   :  { %767 = vperm.xlu1 %2238, %v2575_v33  }
 0x136   :  { %1854 = vmatmul.mubr.f32.gmra.mrb[8].mxu1 %v426_v36 }
 0x137   :  { %1856 = vmatprep.mubr.f32.mxu1 %v427_v37 }
 0x13a   :  { %1857 = vmatmul.mubr.f32.gmra.mrb[10].mxu1 %v428_v38 }
 0x13b   :  { %1859 = vmatprep.mubr.f32.mxu1 %v429_v39  ;;  %v479_v39 = vpop.permute.xlu0 %478 }
 0x13e   :  { %1860 = vmatmul.mubr.f32.gmra.mrb[12].mxu1 %v430_v40 }
 0x13f   :  { %1862 = vmatprep.mubr.f32.mxu1 %v431_v41 }
 0x142   :  { %1863 = vmatmul.mubr.f32.gmra.mrb[14].mxu1 %v432_v42  ;;  %v475_v42 = vpop.permute.xlu1 %474 }
 0x1f9   :  { %v1843_v51 = vpop.f32.mrb[0].mxu1 }
 0x1fa   :  { %v569_v52 = vadd.f32 %v1843_v51, %v439_v46  ;;  %v563_v53 = vpop.f32.mrb[1].mxu1 }
 0x1fb   :  { %v564_v54 = vadd.f32 %v563_v53, %v435_v45 }
 0x1fc   :  { %vm643_vm2 = vcmp.ge.f32.partialorder %v569_v52, 0.0  ;;  %v659_v55 = vmul.f32 0.01, %v569_v52 }
 0x1fd   :  { %vm642_vm3 = vcmp.ge.f32.partialorder %v564_v54, 0.0  ;;  %v658_v57 = vmul.f32 0.01, %v564_v54  ;;  %v1846_v58 = vpop.f32.mrb[2].mxu1 }
 0x1fe   :  { %v579_v60 = vadd.f32 %v1846_v58, %v447_v47  ;;  %v573_v61 = vpop.f32.mrb[3].mxu1  ;;  %v675_v62 = vsel %vm643_vm2, %v569_v52, %v659_v55  ;;  %v487_v55 = vpop.permute.xlu0 %486 }
 0x1ff   :  { %v574_v63 = vadd.f32 %v573_v61, %v443_v48  ;;  %v674_v0 = vsel %vm642_vm3, %v564_v54, %v658_v57  ;;  %v483_v58 = vpop.permute.xlu1 %482 }
 0x200   :  { %vm645_vm4 = vcmp.ge.f32.partialorder %v579_v60, 0.0  ;;  %v661_v1 = vmul.f32 0.01, %v579_v60  ;;  %v2100_v2 = vpack.c.bf16 %v675_v62, %v674_v0 }
 0x201   :  { %vm644_vm5 = vcmp.ge.f32.partialorder %v574_v63, 0.0  ;;  %v660_v3 = vmul.f32 0.01, %v574_v63  ;;  %v1849_v4 = vpop.f32.mrb[4].mxu1 }
 0x202   :  { %v589_v5 = vadd.f32 %v1849_v4, %v455_v49  ;;  %v583_v6 = vpop.f32.mrb[5].mxu1  ;;  %2101 = vmatprep.subr.bf16.mxu0 %v2100_v2  ;;  %v677_v10 = vsel %vm645_vm4, %v579_v60, %v661_v1 }
 0x203   :  { %v584_v14 = vadd.f32 %v583_v6, %v451_v50  ;;  %2103 = vmatpush3.bf16.msra.mxu0 %v2100_v2  ;;  %v676_v16 = vsel %vm644_vm5, %v574_v63, %v660_v3  ;;  %v495_v6 = vpop.permute.xlu0 %494 }
 0x204   :  { %vm647_vm6 = vcmp.ge.f32.partialorder %v589_v5, 0.0  ;;  %v663_v20 = vmul.f32 0.01, %v589_v5  ;;  %v2104_v22 = vpack.c.bf16 %v677_v10, %v676_v16 }
 0x205   :  { %vm646_vm7 = vcmp.ge.f32.partialorder %v584_v14, 0.0  ;;  %v662_v24 = vmul.f32 0.01, %v584_v14  ;;  %v1852_v26 = vpop.f32.mrb[6].mxu1 }
 0x206   :  { %v599_v28 = vadd.f32 %v1852_v26, %v463_v56  ;;  %v593_v30 = vpop.f32.mrb[7].mxu1  ;;  %2105 = vmatprep.subr.bf16.mxu0 %v2104_v22  ;;  %v679_v34 = vsel %vm647_vm6, %v589_v5, %v663_v20 }
 0x207   :  { %v594_v35 = vadd.f32 %v593_v30, %v459_v59  ;;  %2107 = vmatpush3.bf16.msra.mxu0 %v2104_v22  ;;  %v678_v36 = vsel %vm646_vm7, %v584_v14, %v662_v24  ;;  %v491_v14 = vpop.permute.xlu1 %490 }
 0x208   :  { %vm649_vm8 = vcmp.ge.f32.partialorder %v599_v28, 0.0  ;;  %v665_v37 = vmul.f32 0.01, %v599_v28  ;;  %v2108_v38 = vpack.c.bf16 %v679_v34, %v678_v36 }
 0x209   :  { %vm648_vm9 = vcmp.ge.f32.partialorder %v594_v35, 0.0  ;;  %v664_v40 = vmul.f32 0.01, %v594_v35  ;;  %v1855_v41 = vpop.f32.mrb[8].mxu1 }
 0x20a   :  { %v609_v43 = vadd.f32 %v1855_v41, %v471_v12  ;;  %v603_v44 = vpop.f32.mrb[9].mxu1  ;;  %2109 = vmatprep.subr.bf16.mxu0 %v2108_v38  ;;  %v681_v45 = vsel %vm649_vm8, %v599_v28, %v665_v37  ;;  %v691_v37 = vld [vmem:[%s2801_s3 + $0x8] sm:$0xff] }
 0x20b   :  { %v604_v46 = vadd.f32 %v603_v44, %v467_v18  ;;  %2111 = vmatpush3.bf16.msra.mxu0 %v2108_v38  ;;  %v680_v47 = vsel %vm648_vm9, %v594_v35, %v664_v40  ;;  %v692_v38 = vld [vmem:[%s2801_s3 + $0x10] sm:$0xff]  ;;  %v694_v40 = vld [vmem:[%s2801_s3 + $0x20] sm:$0xff]  ;;  %v695_v41 = vld [vmem:[%s2801_s3 + $0x28] sm:$0xff] }
 0x20c   :  { %vm651_vm10 = vcmp.ge.f32.partialorder %v609_v43, 0.0  ;;  %v667_v48 = vmul.f32 0.01, %v609_v43  ;;  %v2112_v49 = vpack.c.bf16 %v681_v45, %v680_v47  ;;  %v698_v44 = vld [vmem:[%s2801_s3 + $0x40] sm:$0xff]  ;;  %v699_v45 = vld [vmem:[%s2801_s3 + $0x48] sm:$0xff]  ;;  %v701_v47 = vld [vmem:[%s2801_s3 + $0x58] sm:$0xff] }
 0x20d   :  { %vm650_vm11 = vcmp.ge.f32.partialorder %v604_v46, 0.0  ;;  %v666_v50 = vmul.f32 0.01, %v604_v46  ;;  %v1858_v51 = vpop.f32.mrb[10].mxu1 }
 0x20e   :  { %v619_v52 = vadd.f32 %v1858_v51, %v479_v39  ;;  %v613_v53 = vpop.f32.mrb[11].mxu1  ;;  %2113 = vmatprep.subr.bf16.mxu0 %v2112_v49  ;;  %v683_v54 = vsel %vm651_vm10, %v609_v43, %v667_v48  ;;  %v693_v39 = vld [vmem:[%s2801_s3 + $0x18] sm:$0xff]  ;;  %v702_v48 = vld [vmem:[%s2801_s3 + $0x60] sm:$0xff] }
 0x20f   :  { %v614_v56 = vadd.f32 %v613_v53, %v475_v42  ;;  %2115 = vmatpush3.bf16.msra.mxu0 %v2112_v49  ;;  %v682_v57 = vsel %vm650_vm11, %v604_v46, %v666_v50  ;;  %v696_v42 = vld [vmem:[%s2801_s3 + $0x30] sm:$0xff]  ;;  %v697_v43 = vld [vmem:[%s2801_s3 + $0x38] sm:$0xff]  ;;  %v703_v49 = vld [vmem:[%s2801_s3 + $0x68] sm:$0xff]  ;;  %v2340_v53 = vmov 3  }
 0x210   :  { %vm653_vm12 = vcmp.ge.f32.partialorder %v619_v52, 0.0  ;;  %v669_v59 = vmul.f32 0.01, %v619_v52  ;;  %v2116_v60 = vpack.c.bf16 %v683_v54, %v682_v57  ;;  %v700_v46 = vld [vmem:[%s2801_s3 + $0x50] sm:$0xff]  ;;  %v705_v51 = vld [vmem:[%s2801_s3 + $0x78] sm:$0xff]  ;;  %2241 = vset.pattern.permute.xlu1 %v2340_v53  ;;  %2240 = vset.pattern.permute.xlu0 %v2340_v53 }
 0x211   :  { %vm652_vm13 = vcmp.ge.f32.partialorder %v614_v56, 0.0  ;;  %v668_v61 = vmul.f32 0.01, %v614_v56  ;;  %v1861_v62 = vpop.f32.mrb[12].mxu1  ;;  %v704_v50 = vld [vmem:[%s2801_s3 + $0x70] sm:$0xff]  ;;  %984 = vperm.xlu1 %2241, %v2453_v9   ;;  %980 = vperm.xlu0 %2240, %v2440_v7   ;;  %v708_v7 = vpop.permute.xlu1 %707 }
 0x212   :  { %v629_v63 = vadd.f32 %v1861_v62, %v487_v55  ;;  %v623_v0 = vpop.f32.mrb[13].mxu1  ;;  %2117 = vmatprep.subr.bf16.mxu0 %v2116_v60  ;;  %v685_v1 = vsel %vm653_vm12, %v619_v52, %v669_v59  ;;  %v963_v52 = vld [vmem:[#allocation2] sm:$0xff] }
 0x213   :  { %v624_v2 = vadd.f32 %v623_v0, %v483_v58  ;;  %2119 = vmatpush3.bf16.msra.mxu0 %v2116_v60  ;;  %v684_v3 = vsel %vm652_vm13, %v614_v56, %v668_v61  ;;  %1953 = vmatprep.mubr.f32.mxu1 %v963_v52 }
 0x214   :  { %vm655_vm14 = vcmp.ge.f32.partialorder %v629_v63, 0.0  ;;  %v671_v4 = vmul.f32 0.01, %v629_v63  ;;  %v2120_v5 = vpack.c.bf16 %v685_v1, %v684_v3 }
 0x215   :  { %vm654_vm15 = vcmp.ge.f32.partialorder %v624_v2, 0.0  ;;  %v670_v10 = vmul.f32 0.01, %v624_v2  ;;  %v1864_v12 = vpop.f32.mrb[14].mxu1  ;;  %988 = vperm.xlu1 %2241, %v2446_v8   ;;  %992 = vperm.xlu0 %2240, %v2462_v11   ;;  %v716_v8 = vpop.permute.xlu1 %715 }
 0x216   :  { %v639_v16 = vadd.f32 %v1864_v12, %v495_v6  ;;  %v633_v18 = vpop.f32.mrb[15].mxu1  ;;  %2121 = vmatprep.subr.bf16.mxu0 %v2120_v5  ;;  %v687_v20 = vsel %vm655_vm14, %v629_v63, %v671_v4  ;;  %v712_v11 = vpop.permute.xlu0 %711 }
 0x217   :  { %v634_v22 = vadd.f32 %v633_v18, %v491_v14  ;;  %2123 = vmatpush3.bf16.msra.mxu0 %v2120_v5  ;;  %v686_v24 = vsel %vm654_vm15, %v624_v2, %v670_v10 }
 0x218   :  { %vm657_vm0 = vcmp.ge.f32.partialorder %v639_v16, 0.0  ;;  %v673_v26 = vmul.f32 0.01, %v639_v16  ;;  %v2124_v28 = vpack.c.bf16 %v687_v20, %v686_v24 }
 0x219   :  { %vm656_vm1 = vcmp.ge.f32.partialorder %v634_v22, 0.0  ;;  %v672_v30 = vmul.f32 0.01, %v634_v22  ;;  %996 = vperm.xlu1 %2241, %v2473_v13   ;;  %1000 = vperm.xlu0 %2240, %v2482_v15   ;;  %v720_v9 = vpop.permute.xlu1 %719 }
 0x21a   :  { %2125 = vmatprep.subr.bf16.mxu0 %v2124_v28  ;;  %v689_v34 = vsel %vm657_vm0, %v639_v16, %v673_v26  ;;  %v724_v15 = vpop.permute.xlu0 %723 }
 0x21b   :  { %2127 = vmatpush3.bf16.msra.mxu0 %v2124_v28  ;;  %v688_v35 = vsel %vm656_vm1, %v634_v22, %v672_v30 }
 0x21c   :  { %v2128_v36 = vpack.c.bf16 %v689_v34, %v688_v35 }
 0x21d   :  { %1004 = vperm.xlu1 %2241, %v2493_v17   ;;  %1008 = vperm.xlu0 %2240, %v2502_v19   ;;  %v728_v13 = vpop.permute.xlu1 %727 }
 0x21e   :  { %2129 = vmatprep.subr.bf16.mxu0 %v2128_v36  ;;  %v732_v54 = vpop.permute.xlu0 %731 }
 0x21f   :  { %2131 = vmatpush3.bf16.msra.mxu0 %v2128_v36 }
 0x221   :  { %1012 = vperm.xlu1 %2241, %v2513_v21   ;;  %1016 = vperm.xlu0 %2240, %v2522_v23  }
 0x222   :  { %1898 = vmatmul.mubr.f32.vlgmr.msra.gmra.mrb[16].mxu0 %v691_v37  ;;  %v740_v4 = vpop.permute.xlu0 %739 }
 0x223   :  { %1900 = vmatprep.mubr.f32.mxu0 %v692_v38 }
 0x225   :  { %1020 = vperm.xlu1 %2241, %v2533_v25   ;;  %1024 = vperm.xlu0 %2240, %v2542_v27   ;;  %v736_v27 = vpop.permute.xlu1 %735 }
 0x226   :  { %1901 = vmatmul.mubr.f32.gmra.mrb[18].mxu0 %v693_v39  ;;  %v748_v35 = vpop.permute.xlu0 %747 }
 0x227   :  { %1903 = vmatprep.mubr.f32.mxu0 %v694_v40 }
 0x229   :  { %1028 = vperm.xlu1 %2241, %v2553_v29   ;;  %1032 = vperm.xlu0 %2240, %v2562_v31   ;;  %v744_v1 = vpop.permute.xlu1 %743 }
 0x22a   :  { %1904 = vmatmul.mubr.f32.gmra.mrb[20].mxu0 %v695_v41 }
 0x22b   :  { %1906 = vmatprep.mubr.f32.mxu0 %v696_v42 }
 0x22d   :  { %1036 = vperm.xlu1 %2241, %v2570_v32   ;;  %1040 = vperm.xlu0 %2240, %v2575_v33   ;;  %v752_v28 = vpop.permute.xlu1 %751 }
 0x22e   :  { %1907 = vmatmul.mubr.f32.gmra.mrb[22].mxu0 %v697_v43 }
 0x22f   :  { %1909 = vmatprep.mubr.f32.mxu0 %v698_v44 }
 0x232   :  { %1910 = vmatmul.mubr.f32.gmra.mrb[24].mxu0 %v699_v45 }
 0x233   :  { %1912 = vmatprep.mubr.f32.mxu0 %v700_v46 }
 0x236   :  { %1913 = vmatmul.mubr.f32.gmra.mrb[26].mxu0 %v701_v47 }
 0x237   :  { %1915 = vmatprep.mubr.f32.mxu0 %v702_v48  ;;  %v760_v48 = vpop.permute.xlu1 %759 }
 0x23a   :  { %1916 = vmatmul.mubr.f32.gmra.mrb[28].mxu0 %v703_v49 }
 0x23b   :  { %1918 = vmatprep.mubr.f32.mxu0 %v704_v50 }
 0x23e   :  { %1919 = vmatmul.mubr.f32.gmra.mrb[30].mxu0 %v705_v51  ;;  %v756_v51 = vpop.permute.xlu0 %755 }
 0x2f5   :  { %v1899_v17 = vpop.f32.mrb[16].mxu0 }
 0x2f6   :  { %v842_v19 = vadd.f32 %v1899_v17, %v712_v11  ;;  %v836_v21 = vpop.f32.mrb[17].mxu0 }
 0x2f7   :  { %v837_v23 = vadd.f32 %v836_v21, %v708_v7 }
 0x2f8   :  { %vm916_vm2 = vcmp.ge.f32.partialorder %v842_v19, 0.0  ;;  %v932_v25 = vmul.f32 0.01, %v842_v19 }
 0x2f9   :  { %vm915_vm3 = vcmp.ge.f32.partialorder %v837_v23, 0.0  ;;  %v931_v29 = vmul.f32 0.01, %v837_v23  ;;  %v1902_v31 = vpop.f32.mrb[18].mxu0 }
 0x2fa   :  { %v852_v32 = vadd.f32 %v1902_v31, %v720_v9  ;;  %v846_v55 = vpop.f32.mrb[19].mxu0  ;;  %v948_v33 = vsel %vm916_vm2, %v842_v19, %v932_v25 }
 0x2fb   :  { %v847_v56 = vadd.f32 %v846_v55, %v716_v8  ;;  %v947_v57 = vsel %vm915_vm3, %v837_v23, %v931_v29  ;;  %v768_v23 = vpop.permute.xlu1 %767  ;;  %v764_v29 = vpop.permute.xlu0 %763 }
 0x2fc   :  { %vm918_vm4 = vcmp.ge.f32.partialorder %v852_v32, 0.0  ;;  %v934_v58 = vmul.f32 0.01, %v852_v32  ;;  %v2132_v59 = vpack.c.bf16 %v948_v33, %v947_v57 }
 0x2fd   :  { %vm917_vm5 = vcmp.ge.f32.partialorder %v847_v56, 0.0  ;;  %v933_v60 = vmul.f32 0.01, %v847_v56  ;;  %v1905_v61 = vpop.f32.mrb[20].mxu0 }
 0x2fe   :  { %v862_v62 = vadd.f32 %v1905_v61, %v728_v13  ;;  %v856_v63 = vpop.f32.mrb[21].mxu0  ;;  %2133 = vmatprep.subr.bf16.mxu1 %v2132_v59  ;;  %v950_v0 = vsel %vm918_vm4, %v852_v32, %v934_v58 }
 0x2ff   :  { %v857_v2 = vadd.f32 %v856_v63, %v724_v15  ;;  %2135 = vmatpush3.bf16.msra.mxu1 %v2132_v59  ;;  %v949_v3 = vsel %vm917_vm5, %v847_v56, %v933_v60  ;;  %v965_v63 = vld [vmem:[#allocation2 + $0x10] sm:$0xff] }
 0x300   :  { %vm920_vm6 = vcmp.ge.f32.partialorder %v862_v62, 0.0  ;;  %v936_v5 = vmul.f32 0.01, %v862_v62  ;;  %v2136_v6 = vpack.c.bf16 %v950_v0, %v949_v3  ;;  %v966_v0 = vld [vmem:[#allocation2 + $0x18] sm:$0xff]  ;;  %v969_v3 = vld [vmem:[#allocation2 + $0x30] sm:$0xff] }
 0x301   :  { %vm919_vm7 = vcmp.ge.f32.partialorder %v857_v2, 0.0  ;;  %v935_v10 = vmul.f32 0.01, %v857_v2  ;;  %v1908_v12 = vpop.f32.mrb[22].mxu0 }
 0x302   :  { %v872_v14 = vadd.f32 %v1908_v12, %v736_v27  ;;  %v866_v16 = vpop.f32.mrb[23].mxu0  ;;  %2137 = vmatprep.subr.bf16.mxu1 %v2136_v6  ;;  %v952_v18 = vsel %vm920_vm6, %v862_v62, %v936_v5  ;;  %v964_v62 = vld [vmem:[#allocation2 + $0x8] sm:$0xff]  ;;  %v971_v5 = vld [vmem:[#allocation2 + $0x40] sm:$0xff]  ;;  %v974_v12 = vld [vmem:[#allocation2 + $0x58] sm:$0xff] }
 0x303   :  { %v867_v20 = vadd.f32 %v866_v16, %v732_v54  ;;  %2139 = vmatpush3.bf16.msra.mxu1 %v2136_v6  ;;  %v951_v22 = vsel %vm919_vm7, %v857_v2, %v935_v10  ;;  %v968_v2 = vld [vmem:[#allocation2 + $0x28] sm:$0xff]  ;;  %v973_v10 = vld [vmem:[#allocation2 + $0x50] sm:$0xff] }
 0x304   :  { %vm922_vm8 = vcmp.ge.f32.partialorder %v872_v14, 0.0  ;;  %v938_v24 = vmul.f32 0.01, %v872_v14  ;;  %v2140_v26 = vpack.c.bf16 %v952_v18, %v951_v22  ;;  %v972_v6 = vld [vmem:[#allocation2 + $0x48] sm:$0xff]  ;;  %v977_v18 = vld [vmem:[#allocation2 + $0x70] sm:$0xff]  ;;  %v1236_v22 = vld [vmem:[#allocation5] sm:$0xff] }
 0x305   :  { %vm921_vm9 = vcmp.ge.f32.partialorder %v867_v20, 0.0  ;;  %v937_v30 = vmul.f32 0.01, %v867_v20  ;;  %v1911_v34 = vpop.f32.mrb[24].mxu0  ;;  %v976_v16 = vld [vmem:[#allocation2 + $0x68] sm:$0xff]  ;;  %2009 = vmatprep.mubr.f32.mxu0 %v1236_v22 }
 0x306   :  { %v882_v36 = vadd.f32 %v1911_v34, %v744_v1  ;;  %v876_v37 = vpop.f32.mrb[25].mxu0  ;;  %2141 = vmatprep.subr.bf16.mxu1 %v2140_v26  ;;  %v954_v38 = vsel %vm922_vm8, %v872_v14, %v938_v24  ;;  %v967_v1 = vld [vmem:[#allocation2 + $0x20] sm:$0xff]  ;;  %v2341_v24 = vmov 4  }
 0x307   :  { %v877_v39 = vadd.f32 %v876_v37, %v740_v4  ;;  %2143 = vmatpush3.bf16.msra.mxu1 %v2140_v26  ;;  %v953_v40 = vsel %vm921_vm9, %v867_v20, %v937_v30  ;;  %v970_v4 = vld [vmem:[#allocation2 + $0x38] sm:$0xff]  ;;  %v975_v14 = vld [vmem:[#allocation2 + $0x60] sm:$0xff]  ;;  %2242 = vset.pattern.permute.xlu1 %v2341_v24  ;;  %v2247_v30 = vld [vmem:[%s2805_s7 + $0x10] sm:$0xff] }
 0x308   :  { %vm924_vm10 = vcmp.ge.f32.partialorder %v882_v36, 0.0  ;;  %v940_v41 = vmul.f32 0.01, %v882_v36  ;;  %v2144_v42 = vpack.c.bf16 %v954_v38, %v953_v40  ;;  %v978_v20 = vld [vmem:[#allocation2 + $0x78] sm:$0xff]  ;;  %2243 = vset.pattern.permute.xlu0 %v2341_v24  ;;  %v2726_v26 = vld [vmem:[%s2805_s7] sm:$0xff]  ;;  %v2251_v37 = vld [vmem:[%s2805_s7 + $0x28] sm:$0xff] }
 0x309   :  { %vm923_vm11 = vcmp.ge.f32.partialorder %v877_v39, 0.0  ;;  %v939_v43 = vmul.f32 0.01, %v877_v39  ;;  %v1914_v44 = vpop.f32.mrb[26].mxu0  ;;  %1253 = vperm.xlu1 %2242, %v2726_v26   ;;  %v2248_v34 = vld [vmem:[%s2805_s7 + $0x20] sm:$0xff]  ;;  %v2254_v40 = vld [vmem:[%s2805_s7 + $0x50] sm:$0xff] }
 0x30a   :  { %v892_v45 = vadd.f32 %v1914_v44, %v752_v28  ;;  %v886_v46 = vpop.f32.mrb[27].mxu0  ;;  %2145 = vmatprep.subr.bf16.mxu1 %v2144_v42  ;;  %v956_v47 = vsel %vm924_vm10, %v882_v36, %v940_v41  ;;  %v2246_v28 = vld [vmem:[%s2805_s7 + $0x8] sm:$0xff]  ;;  %v2250_v36 = vld [vmem:[%s2805_s7 + $0x30] sm:$0xff]  ;;  %v2252_v38 = vld [vmem:[%s2805_s7 + $0x40] sm:$0xff] }
 0x30b   :  { %v887_v49 = vadd.f32 %v886_v46, %v748_v35  ;;  %2147 = vmatpush3.bf16.msra.mxu1 %v2144_v42  ;;  %v955_v50 = vsel %vm923_vm11, %v877_v39, %v939_v43  ;;  %1257 = vperm.xlu0 %2243, %v2246_v28   ;;  %v2249_v35 = vld [vmem:[%s2805_s7 + $0x18] sm:$0xff]  ;;  %v2255_v41 = vld [vmem:[%s2805_s7 + $0x48] sm:$0xff]  ;;  %v2256_v42 = vld [vmem:[%s2805_s7 + $0x60] sm:$0xff] }
 0x30c   :  { %vm926_vm12 = vcmp.ge.f32.partialorder %v892_v45, 0.0  ;;  %v942_v52 = vmul.f32 0.01, %v892_v45  ;;  %v2148_v53 = vpack.c.bf16 %v956_v47, %v955_v50  ;;  %v2253_v39 = vld [vmem:[%s2805_s7 + $0x38] sm:$0xff]  ;;  %v2258_v44 = vld [vmem:[%s2805_s7 + $0x70] sm:$0xff]  ;;  %v981_v47 = vpop.permute.xlu0 %980 }
 0x30d   :  { %vm925_vm13 = vcmp.ge.f32.partialorder %v887_v49, 0.0  ;;  %v941_v7 = vmul.f32 0.01, %v887_v49  ;;  %v1917_v8 = vpop.f32.mrb[28].mxu0  ;;  %1261 = vperm.xlu1 %2242, %v2247_v30   ;;  %v2257_v43 = vld [vmem:[%s2805_s7 + $0x58] sm:$0xff] }
 0x30e   :  { %v902_v9 = vadd.f32 %v1917_v8, %v760_v48  ;;  %v896_v11 = vpop.f32.mrb[29].mxu0  ;;  %2149 = vmatprep.subr.bf16.mxu1 %v2148_v53  ;;  %v958_v13 = vsel %vm926_vm12, %v892_v45, %v942_v52  ;;  %v2259_v45 = vld [vmem:[%s2805_s7 + $0x68] sm:$0xff]  ;;  %v2260_v46 = vld [vmem:[%s2805_s7 + $0x78] sm:$0xff]  ;;  %v985_v48 = vpop.permute.xlu1 %984 }
 0x30f   :  { %v897_v15 = vadd.f32 %v896_v11, %v756_v51  ;;  %2151 = vmatpush3.bf16.msra.mxu1 %v2148_v53  ;;  %v957_v17 = vsel %vm925_vm13, %v887_v49, %v941_v7  ;;  %1269 = vperm.xlu0 %2243, %v2248_v34  }
 0x310   :  { %vm928_vm14 = vcmp.ge.f32.partialorder %v902_v9, 0.0  ;;  %v944_v19 = vmul.f32 0.01, %v902_v9  ;;  %v2152_v21 = vpack.c.bf16 %v958_v13, %v957_v17  ;;  %v993_v49 = vpop.permute.xlu0 %992 }
 0x311   :  { %vm927_vm15 = vcmp.ge.f32.partialorder %v897_v15, 0.0  ;;  %v943_v25 = vmul.f32 0.01, %v897_v15  ;;  %v1920_v27 = vpop.f32.mrb[30].mxu0  ;;  %1265 = vperm.xlu1 %2242, %v2249_v35  }
 0x312   :  { %v912_v31 = vadd.f32 %v1920_v27, %v768_v23  ;;  %v906_v54 = vpop.f32.mrb[31].mxu0  ;;  %2153 = vmatprep.subr.bf16.mxu1 %v2152_v21  ;;  %v960_v32 = vsel %vm928_vm14, %v902_v9, %v944_v19  ;;  %v989_v50 = vpop.permute.xlu1 %988 }
 0x313   :  { %v907_v55 = vadd.f32 %v906_v54, %v764_v29  ;;  %2155 = vmatpush3.bf16.msra.mxu1 %v2152_v21  ;;  %v959_v33 = vsel %vm927_vm15, %v897_v15, %v943_v25  ;;  %1277 = vperm.xlu0 %2243, %v2250_v36  }
 0x314   :  { %vm930_vm0 = vcmp.ge.f32.partialorder %v912_v31, 0.0  ;;  %v946_v56 = vmul.f32 0.01, %v912_v31  ;;  %v2156_v57 = vpack.c.bf16 %v960_v32, %v959_v33  ;;  %v1001_v51 = vpop.permute.xlu0 %1000 }
 0x315   :  { %vm929_vm1 = vcmp.ge.f32.partialorder %v907_v55, 0.0  ;;  %v945_v58 = vmul.f32 0.01, %v907_v55  ;;  %1273 = vperm.xlu1 %2242, %v2251_v37  }
 0x316   :  { %2157 = vmatprep.subr.bf16.mxu1 %v2156_v57  ;;  %v962_v59 = vsel %vm930_vm0, %v912_v31, %v946_v56  ;;  %v997_v52 = vpop.permute.xlu1 %996 }
 0x317   :  { %2159 = vmatpush3.bf16.msra.mxu1 %v2156_v57  ;;  %v961_v60 = vsel %vm929_vm1, %v907_v55, %v945_v58  ;;  %1285 = vperm.xlu0 %2243, %v2252_v38  }
 0x318   :  { %v2160_v61 = vpack.c.bf16 %v962_v59, %v961_v60  ;;  %v1009_v13 = vpop.permute.xlu0 %1008 }
 0x319   :  { %1281 = vperm.xlu1 %2242, %v2253_v39  }
 0x31a   :  { %2161 = vmatprep.subr.bf16.mxu1 %v2160_v61  ;;  %v1005_v19 = vpop.permute.xlu1 %1004 }
 0x31b   :  { %2163 = vmatpush3.bf16.msra.mxu1 %v2160_v61  ;;  %1293 = vperm.xlu0 %2243, %v2254_v40  }
 0x31c   :  { %v1017_v58 = vpop.permute.xlu0 %1016 }
 0x31d   :  { %1289 = vperm.xlu1 %2242, %v2255_v41  }
 0x31e   :  { %1954 = vmatmul.mubr.f32.vlgmr.msra.gmra.mrb[16].mxu1 %v964_v62  ;;  %v1013_v61 = vpop.permute.xlu1 %1012 }
 0x31f   :  { %1956 = vmatprep.mubr.f32.mxu1 %v965_v63  ;;  %1301 = vperm.xlu0 %2243, %v2256_v42  }
 0x321   :  { %1297 = vperm.xlu1 %2242, %v2257_v43  }
 0x322   :  { %1957 = vmatmul.mubr.f32.gmra.mrb[18].mxu1 %v966_v0 }
 0x323   :  { %1959 = vmatprep.mubr.f32.mxu1 %v967_v1  ;;  %1309 = vperm.xlu0 %2243, %v2258_v44  }
 0x325   :  { %1305 = vperm.xlu1 %2242, %v2259_v45  }
 0x326   :  { %1960 = vmatmul.mubr.f32.gmra.mrb[20].mxu1 %v968_v2 }
 0x327   :  { %1962 = vmatprep.mubr.f32.mxu1 %v969_v3 }
 0x329   :  { %1313 = vperm.xlu1 %2242, %v2260_v46  }
 0x32a   :  { %1963 = vmatmul.mubr.f32.gmra.mrb[22].mxu1 %v970_v4 }
 0x32b   :  { %1965 = vmatprep.mubr.f32.mxu1 %v971_v5 }
 0x32e   :  { %1966 = vmatmul.mubr.f32.gmra.mrb[24].mxu1 %v972_v6 }
 0x32f   :  { %1968 = vmatprep.mubr.f32.mxu1 %v973_v10 }
 0x332   :  { %1969 = vmatmul.mubr.f32.gmra.mrb[26].mxu1 %v974_v12 }
 0x333   :  { %1971 = vmatprep.mubr.f32.mxu1 %v975_v14  ;;  %v1025_v14 = vpop.permute.xlu0 %1024 }
 0x336   :  { %1972 = vmatmul.mubr.f32.gmra.mrb[28].mxu1 %v976_v16 }
 0x337   :  { %1974 = vmatprep.mubr.f32.mxu1 %v977_v18  ;;  %v1033_v42 = vpop.permute.xlu0 %1032 }
 0x33a   :  { %1975 = vmatmul.mubr.f32.gmra.mrb[30].mxu1 %v978_v20  ;;  %v1021_v20 = vpop.permute.xlu1 %1020 }
 0x33e   :  { %v1029_v45 = vpop.permute.xlu1 %1028 }
 0x3f1   :  { %v1955_v53 = vpop.f32.mrb[16].mxu1 }
 0x3f2   :  { %v1115_v7 = vadd.f32 %v1955_v53, %v985_v48  ;;  %v1109_v8 = vpop.f32.mrb[17].mxu1 }
 0x3f3   :  { %v1110_v9 = vadd.f32 %v1109_v8, %v981_v47 }
 0x3f4   :  { %vm1189_vm2 = vcmp.ge.f32.partialorder %v1115_v7, 0.0  ;;  %v1205_v11 = vmul.f32 0.01, %v1115_v7 }
 0x3f5   :  { %vm1188_vm3 = vcmp.ge.f32.partialorder %v1110_v9, 0.0  ;;  %v1204_v15 = vmul.f32 0.01, %v1110_v9  ;;  %v1958_v17 = vpop.f32.mrb[18].mxu1 }
 0x3f6   :  { %v1125_v21 = vadd.f32 %v1958_v17, %v993_v49  ;;  %v1119_v23 = vpop.f32.mrb[19].mxu1  ;;  %v1221_v25 = vsel %vm1189_vm2, %v1115_v7, %v1205_v11  ;;  %v1041_v11 = vpop.permute.xlu0 %1040  ;;  %vm2343_vm2 = vmmov 0  }
 0x3f7   :  { %v1120_v27 = vadd.f32 %v1119_v23, %v989_v50  ;;  %v1220_v29 = vsel %vm1188_vm3, %v1110_v9, %v1204_v15  ;;  %v1037_v17 = vpop.permute.xlu1 %1036 }
 0x3f8   :  { %vm1191_vm4 = vcmp.ge.f32.partialorder %v1125_v21, 0.0  ;;  %v1207_v31 = vmul.f32 0.01, %v1125_v21  ;;  %v2164_v54 = vpack.c.bf16 %v1221_v25, %v1220_v29 }
 0x3f9   :  { %vm1190_vm5 = vcmp.ge.f32.partialorder %v1120_v27, 0.0  ;;  %v1206_v32 = vmul.f32 0.01, %v1120_v27  ;;  %v1961_v55 = vpop.f32.mrb[20].mxu1 }
 0x3fa   :  { %v1135_v33 = vadd.f32 %v1961_v55, %v1001_v51  ;;  %v1129_v56 = vpop.f32.mrb[21].mxu1  ;;  %2165 = vmatprep.subr.bf16.mxu0 %v2164_v54  ;;  %v1223_v57 = vsel %vm1191_vm4, %v1125_v21, %v1207_v31 }
 0x3fb   :  { %v1130_v59 = vadd.f32 %v1129_v56, %v997_v52  ;;  %2167 = vmatpush3.bf16.msra.mxu0 %v2164_v54  ;;  %v1222_v60 = vsel %vm1190_vm5, %v1120_v27, %v1206_v32  ;;  %v1237_v56 = vld [vmem:[#allocation5 + $0x8] sm:$0xff] }
 0x3fc   :  { %vm1193_vm6 = vcmp.ge.f32.partialorder %v1135_v33, 0.0  ;;  %v1209_v62 = vmul.f32 0.01, %v1135_v33  ;;  %v2168_v63 = vpack.c.bf16 %v1223_v57, %v1222_v60  ;;  %v1238_v57 = vld [vmem:[#allocation5 + $0x10] sm:$0xff]  ;;  %v1241_v60 = vld [vmem:[#allocation5 + $0x28] sm:$0xff] }
 0x3fd   :  { %vm1192_vm7 = vcmp.ge.f32.partialorder %v1130_v59, 0.0  ;;  %v1208_v0 = vmul.f32 0.01, %v1130_v59  ;;  %v1964_v1 = vpop.f32.mrb[22].mxu1 }
 0x3fe   :  { %v1145_v2 = vadd.f32 %v1964_v1, %v1009_v13  ;;  %v1139_v3 = vpop.f32.mrb[23].mxu1  ;;  %2169 = vmatprep.subr.bf16.mxu0 %v2168_v63  ;;  %v1225_v4 = vsel %vm1193_vm6, %v1135_v33, %v1209_v62  ;;  %v1243_v62 = vld [vmem:[#allocation5 + $0x38] sm:$0xff]  ;;  %v1246_v1 = vld [vmem:[#allocation5 + $0x50] sm:$0xff] }
 0x3ff   :  { %v1140_v5 = vadd.f32 %v1139_v3, %v1005_v19  ;;  %2171 = vmatpush3.bf16.msra.mxu0 %v2168_v63  ;;  %v1224_v6 = vsel %vm1192_vm7, %v1130_v59, %v1208_v0  ;;  %v1240_v59 = vld [vmem:[#allocation5 + $0x20] sm:$0xff]  ;;  %v1245_v0 = vld [vmem:[#allocation5 + $0x48] sm:$0xff] }
 0x400   :  { %vm1195_vm8 = vcmp.ge.f32.partialorder %v1145_v2, 0.0  ;;  %v1211_v10 = vmul.f32 0.01, %v1145_v2  ;;  %v2172_v12 = vpack.c.bf16 %v1225_v4, %v1224_v6  ;;  %v1244_v63 = vld [vmem:[#allocation5 + $0x40] sm:$0xff]  ;;  %v1249_v4 = vld [vmem:[#allocation5 + $0x68] sm:$0xff]  ;;  %v1251_v6 = vld [vmem:[#allocation5 + $0x78] sm:$0xff] }
 0x401   :  { %vm1194_vm9 = vcmp.ge.f32.partialorder %v1140_v5, 0.0  ;;  %v1210_v16 = vmul.f32 0.01, %v1140_v5  ;;  %v1967_v18 = vpop.f32.mrb[24].mxu1  ;;  %v1248_v3 = vld [vmem:[#allocation5 + $0x60] sm:$0xff] }
 0x402   :  { %v1155_v22 = vadd.f32 %v1967_v18, %v1017_v58  ;;  %v1149_v24 = vpop.f32.mrb[25].mxu1  ;;  %2173 = vmatprep.subr.bf16.mxu0 %v2172_v12  ;;  %v1227_v28 = vsel %vm1195_vm8, %v1145_v2, %v1211_v10  ;;  %v1239_v58 = vld [vmem:[#allocation5 + $0x18] sm:$0xff]  ;;  %v2342_v10 = vmov 0.0|0.0  }
 0x403   :  { %v1150_v30 = vadd.f32 %v1149_v24, %v1013_v61  ;;  %2175 = vmatpush3.bf16.msra.mxu0 %v2172_v12  ;;  %v1226_v34 = vsel %vm1194_vm9, %v1140_v5, %v1210_v16  ;;  %v1242_v61 = vld [vmem:[#allocation5 + $0x30] sm:$0xff]  ;;  %v1247_v2 = vld [vmem:[#allocation5 + $0x58] sm:$0xff]  ;;  %2196 = vmatprep.subr.bf16.mxu1 %v2342_v10  ;;  %v2344_v12 = vmov 0.0   ;;  %v1254_v16 = vpop.permute.xlu1 %1253 }
 0x404   :  { %vm1197_vm10 = vcmp.ge.f32.partialorder %v1155_v22, 0.0  ;;  %v1213_v35 = vmul.f32 0.01, %v1155_v22  ;;  %v2176_v36 = vpack.c.bf16 %v1227_v28, %v1226_v34  ;;  %v1250_v5 = vld [vmem:[#allocation5 + $0x70] sm:$0xff]  ;;  %2065 = vmatprep.mubr.msk.f32.mxu1 %vm2343_vm2, %v2344_v12 }
 0x405   :  { %vm1196_vm11 = vcmp.ge.f32.partialorder %v1150_v30, 0.0  ;;  %v1212_v37 = vmul.f32 0.01, %v1150_v30  ;;  %v1970_v38 = vpop.f32.mrb[26].mxu1 }
 0x406   :  { %v1165_v39 = vadd.f32 %v1970_v38, %v1025_v14  ;;  %v1159_v40 = vpop.f32.mrb[27].mxu1  ;;  %2177 = vmatprep.subr.bf16.mxu0 %v2176_v36  ;;  %v1229_v41 = vsel %vm1197_vm10, %v1155_v22, %v1213_v35  ;;  %v2345_v14 = vmov 5   ;;  %v1258_v22 = vpop.permute.xlu0 %1257 }
 0x407   :  { %v1160_v43 = vadd.f32 %v1159_v40, %v1021_v20  ;;  %2179 = vmatpush3.bf16.msra.mxu0 %v2176_v36  ;;  %v1228_v44 = vsel %vm1196_vm11, %v1150_v30, %v1212_v37  ;;  %2244 = vset.pattern.permute.xlu0 %v2345_v14  ;;  %v1262_v18 = vpop.permute.xlu1 %1261 }
 0x408   :  { %vm1199_vm12 = vcmp.ge.f32.partialorder %v1165_v39, 0.0  ;;  %v1215_v46 = vmul.f32 0.01, %v1165_v39  ;;  %v2180_v47 = vpack.c.bf16 %v1229_v41, %v1228_v44  ;;  %1511 = vperm.xlu0 %2244, %v2726_v26  }
 0x409   :  { %vm1198_vm13 = vcmp.ge.f32.partialorder %v1160_v43, 0.0  ;;  %v1214_v48 = vmul.f32 0.01, %v1160_v43  ;;  %v1973_v49 = vpop.f32.mrb[28].mxu1 }
 0x40a   :  { %v1175_v50 = vadd.f32 %v1973_v49, %v1033_v42  ;;  %v1169_v51 = vpop.f32.mrb[29].mxu1  ;;  %2181 = vmatprep.subr.bf16.mxu0 %v2180_v47  ;;  %v1231_v52 = vsel %vm1199_vm12, %v1165_v39, %v1215_v46  ;;  %v1270_v28 = vpop.permute.xlu0 %1269 }
 0x40b   :  { %v1170_v53 = vadd.f32 %v1169_v51, %v1029_v45  ;;  %2183 = vmatpush3.bf16.msra.mxu0 %v2180_v47  ;;  %v1230_v7 = vsel %vm1198_vm13, %v1160_v43, %v1214_v48  ;;  %v1266_v20 = vpop.permute.xlu1 %1265 }
 0x40c   :  { %vm1201_vm14 = vcmp.ge.f32.partialorder %v1175_v50, 0.0  ;;  %v1217_v8 = vmul.f32 0.01, %v1175_v50  ;;  %v2184_v9 = vpack.c.bf16 %v1231_v52, %v1230_v7 }
 0x40d   :  { %vm1200_vm15 = vcmp.ge.f32.partialorder %v1170_v53, 0.0  ;;  %v1216_v13 = vmul.f32 0.01, %v1170_v53  ;;  %v1976_v15 = vpop.f32.mrb[30].mxu1 }
 0x40e   :  { %v1185_v19 = vadd.f32 %v1976_v15, %v1041_v11  ;;  %v1179_v21 = vpop.f32.mrb[31].mxu1  ;;  %2185 = vmatprep.subr.bf16.mxu0 %v2184_v9  ;;  %v1233_v23 = vsel %vm1201_vm14, %v1175_v50, %v1217_v8  ;;  %v1278_v41 = vpop.permute.xlu0 %1277 }
 0x40f   :  { %v1180_v25 = vadd.f32 %v1179_v21, %v1037_v17  ;;  %2187 = vmatpush3.bf16.msra.mxu0 %v2184_v9  ;;  %v1232_v27 = vsel %vm1200_vm15, %v1170_v53, %v1216_v13  ;;  %v1274_v24 = vpop.permute.xlu1 %1273 }
 0x410   :  { %vm1203_vm0 = vcmp.ge.f32.partialorder %v1185_v19, 0.0  ;;  %v1219_v29 = vmul.f32 0.01, %v1185_v19  ;;  %v2188_v31 = vpack.c.bf16 %v1233_v23, %v1232_v27 }
 0x411   :  { %vm1202_vm1 = vcmp.ge.f32.partialorder %v1180_v25, 0.0  ;;  %v1218_v54 = vmul.f32 0.01, %v1180_v25 }
 0x412   :  { %2189 = vmatprep.subr.bf16.mxu0 %v2188_v31  ;;  %v1235_v32 = vsel %vm1203_vm0, %v1185_v19, %v1219_v29  ;;  %v1286_v9 = vpop.permute.xlu0 %1285 }
 0x413   :  { %2191 = vmatpush3.bf16.msra.mxu0 %v2188_v31  ;;  %v1234_v55 = vsel %vm1202_vm1, %v1180_v25, %v1218_v54  ;;  %v1282_v38 = vpop.permute.xlu1 %1281 }
 0x414   :  { %v2192_v33 = vpack.c.bf16 %v1235_v32, %v1234_v55 }
 0x416   :  { %2193 = vmatprep.subr.bf16.mxu0 %v2192_v33 }
 0x417   :  { %2195 = vmatpush3.bf16.msra.mxu0 %v2192_v33  ;;  %v1290_v53 = vpop.permute.xlu1 %1289  ;;  %v1294_v33 = vpop.permute.xlu0 %1293 }
 0x41a   :  { %2010 = vmatmul.mubr.f32.vlgmr.msra.gmra.mrb[32].mxu0 %v1237_v56 }
 0x41b   :  { %2012 = vmatprep.mubr.f32.mxu0 %v1238_v57  ;;  %v1298_v54 = vpop.permute.xlu1 %1297  ;;  %v1302_v12 = vpop.permute.xlu0 %1301 }
 0x41e   :  { %2013 = vmatmul.mubr.f32.gmra.mrb[34].mxu0 %v1239_v58 }
 0x41f   :  { %2015 = vmatprep.mubr.f32.mxu0 %v1240_v59 }
 0x422   :  { %2016 = vmatmul.mubr.f32.gmra.mrb[36].mxu0 %v1241_v60 }
 0x423   :  { %2018 = vmatprep.mubr.f32.mxu0 %v1242_v61 }
 0x426   :  { %2019 = vmatmul.mubr.f32.gmra.mrb[38].mxu0 %v1243_v62 }
 0x427   :  { %2021 = vmatprep.mubr.f32.mxu0 %v1244_v63 }
 0x42a   :  { %2022 = vmatmul.mubr.f32.gmra.mrb[40].mxu0 %v1245_v0 }
 0x42b   :  { %2024 = vmatprep.mubr.f32.mxu0 %v1246_v1 }
 0x42e   :  { %2025 = vmatmul.mubr.f32.gmra.mrb[42].mxu0 %v1247_v2 }
 0x42f   :  { %2027 = vmatprep.mubr.f32.mxu0 %v1248_v3 }
 0x432   :  { %2028 = vmatmul.mubr.f32.gmra.mrb[44].mxu0 %v1249_v4  ;;  %v1306_v4 = vpop.permute.xlu1 %1305 }
 0x433   :  { %2030 = vmatprep.mubr.f32.mxu0 %v1250_v5 }
 0x436   :  { %2031 = vmatmul.mubr.f32.gmra.mrb[46].mxu0 %v1251_v6 }
 0x4ed   :  { %v2011_v30 = vpop.f32.mrb[32].mxu0 }
 0x4ee   :  { %v1388_v34 = vadd.f32 %v2011_v30, %v1258_v22  ;;  %v1382_v35 = vpop.f32.mrb[33].mxu0 }
 0x4ef   :  { %v1383_v36 = vadd.f32 %v1382_v35, %v1254_v16 }
 0x4f0   :  { %vm1462_vm3 = vcmp.ge.f32.partialorder %v1388_v34, 0.0  ;;  %v1478_v37 = vmul.f32 0.01, %v1388_v34 }
 0x4f1   :  { %vm1461_vm4 = vcmp.ge.f32.partialorder %v1383_v36, 0.0  ;;  %v1477_v39 = vmul.f32 0.01, %v1383_v36  ;;  %v2014_v40 = vpop.f32.mrb[34].mxu0 }
 0x4f2   :  { %v1494_v42 = vsel %vm1462_vm3, %v1388_v34, %v1478_v37  ;;  %v1398_v43 = vadd.f32 %v2014_v40, %v1266_v20  ;;  %v1392_v26 = vpop.f32.mrb[35].mxu0  ;;  %v1314_v37 = vpop.permute.xlu1 %1313 }
 0x4f3   :  { %v1493_v44 = vsel %vm1461_vm4, %v1383_v36, %v1477_v39  ;;  %v1393_v45 = vadd.f32 %v1392_v26, %v1262_v18  ;;  %v1310_v40 = vpop.permute.xlu0 %1309 }
 0x4f4   :  { %v2197_v46 = vpack.c.bf16 %v1494_v42, %v1493_v44  ;;  %vm1464_vm5 = vcmp.ge.f32.partialorder %v1398_v43, 0.0  ;;  %v1480_v47 = vmul.f32 0.01, %v1398_v43 }
 0x4f5   :  { %vm1463_vm6 = vcmp.ge.f32.partialorder %v1393_v45, 0.0  ;;  %v1479_v48 = vmul.f32 0.01, %v1393_v45  ;;  %v2017_v49 = vpop.f32.mrb[36].mxu0 }
 0x4f6   :  { %v1496_v50 = vsel %vm1464_vm5, %v1398_v43, %v1480_v47  ;;  %v1408_v51 = vadd.f32 %v2017_v49, %v1274_v24  ;;  %v1402_v52 = vpop.f32.mrb[37].mxu0  ;;  %2198 = vmatpush3.bf16.msra.mxu1 %v2197_v46 }
 0x4f7   :  { %v1495_v7 = vsel %vm1463_vm6, %v1393_v45, %v1479_v48  ;;  %v1403_v8 = vadd.f32 %v1402_v52, %v1270_v28  ;;  %2199 = vmatprep.subr.bf16.mxu1 %v2342_v10  ;;  %v1512_v52 = vpop.permute.xlu0 %1511 }
 0x4f8   :  { %v2200_v11 = vpack.c.bf16 %v1496_v50, %v1495_v7  ;;  %vm1466_vm7 = vcmp.ge.f32.partialorder %v1408_v51, 0.0  ;;  %v1482_v13 = vmul.f32 0.01, %v1408_v51 }
 0x4f9   :  { %vm1465_vm8 = vcmp.ge.f32.partialorder %v1403_v8, 0.0  ;;  %v1481_v15 = vmul.f32 0.01, %v1403_v8  ;;  %v2020_v17 = vpop.f32.mrb[38].mxu0 }
 0x4fa   :  { %v1498_v19 = vsel %vm1466_vm7, %v1408_v51, %v1482_v13  ;;  %v1418_v21 = vadd.f32 %v2020_v17, %v1282_v38  ;;  %v1412_v23 = vpop.f32.mrb[39].mxu0  ;;  %2201 = vmatpush3.bf16.msra.mxu1 %v2200_v11  ;;  %v1509_v51 = vld [vmem:[%s2804_s6] sm:$0x3] }
 0x4fb   :  { %v1497_v25 = vsel %vm1465_vm8, %v1403_v8, %v1481_v15  ;;  %v1413_v27 = vadd.f32 %v1412_v23, %v1278_v41  ;;  %2202 = vmatprep.subr.bf16.mxu1 %v2342_v10 }
 0x4fc   :  { %v2203_v29 = vpack.c.bf16 %v1498_v19, %v1497_v25  ;;  %vm1468_vm9 = vcmp.ge.f32.partialorder %v1418_v21, 0.0  ;;  %v1484_v31 = vmul.f32 0.01, %v1418_v21 }
 0x4fd   :  { %vm1467_vm10 = vcmp.ge.f32.partialorder %v1413_v27, 0.0  ;;  %v1483_v32 = vmul.f32 0.01, %v1413_v27  ;;  %v2023_v55 = vpop.f32.mrb[40].mxu0 }
 0x4fe   :  { %v1500_v56 = vsel %vm1468_vm9, %v1418_v21, %v1484_v31  ;;  %v1428_v57 = vadd.f32 %v2023_v55, %v1290_v53  ;;  %v1422_v58 = vpop.f32.mrb[41].mxu0  ;;  %2204 = vmatpush3.bf16.msra.mxu1 %v2203_v29 }
 0x4ff   :  { %v1499_v59 = vsel %vm1467_vm10, %v1413_v27, %v1483_v32  ;;  %v1423_v60 = vadd.f32 %v1422_v58, %v1286_v9  ;;  %2205 = vmatprep.subr.bf16.mxu1 %v2342_v10 }
 0x500   :  { %v2206_v61 = vpack.c.bf16 %v1500_v56, %v1499_v59  ;;  %vm1470_vm11 = vcmp.ge.f32.partialorder %v1428_v57, 0.0  ;;  %v1486_v62 = vmul.f32 0.01, %v1428_v57 }
 0x501   :  { %vm1469_vm12 = vcmp.ge.f32.partialorder %v1423_v60, 0.0  ;;  %v1485_v63 = vmul.f32 0.01, %v1423_v60  ;;  %v2026_v0 = vpop.f32.mrb[42].mxu0 }
 0x502   :  { %v1502_v1 = vsel %vm1470_vm11, %v1428_v57, %v1486_v62  ;;  %v1438_v2 = vadd.f32 %v2026_v0, %v1298_v54  ;;  %v1432_v3 = vpop.f32.mrb[43].mxu0  ;;  %2207 = vmatpush3.bf16.msra.mxu1 %v2206_v61 }
 0x503   :  { %v1501_v5 = vsel %vm1469_vm12, %v1423_v60, %v1485_v63  ;;  %v1433_v6 = vadd.f32 %v1432_v3, %v1294_v33  ;;  %2208 = vmatprep.subr.bf16.mxu1 %v2342_v10 }
 0x504   :  { %v2209_v14 = vpack.c.bf16 %v1502_v1, %v1501_v5  ;;  %vm1472_vm13 = vcmp.ge.f32.partialorder %v1438_v2, 0.0  ;;  %v1488_v16 = vmul.f32 0.01, %v1438_v2 }
 0x505   :  { %vm1471_vm14 = vcmp.ge.f32.partialorder %v1433_v6, 0.0  ;;  %v1487_v18 = vmul.f32 0.01, %v1433_v6  ;;  %v2029_v20 = vpop.f32.mrb[44].mxu0 }
 0x506   :  { %v1504_v22 = vsel %vm1472_vm13, %v1438_v2, %v1488_v16  ;;  %v1448_v24 = vadd.f32 %v2029_v20, %v1306_v4  ;;  %v1442_v28 = vpop.f32.mrb[45].mxu0  ;;  %2210 = vmatpush3.bf16.msra.mxu1 %v2209_v14 }
 0x507   :  { %v1503_v30 = vsel %vm1471_vm14, %v1433_v6, %v1487_v18  ;;  %v1443_v34 = vadd.f32 %v1442_v28, %v1302_v12  ;;  %2211 = vmatprep.subr.bf16.mxu1 %v2342_v10 }
 0x508   :  { %v2212_v35 = vpack.c.bf16 %v1504_v22, %v1503_v30  ;;  %vm1474_vm15 = vcmp.ge.f32.partialorder %v1448_v24, 0.0  ;;  %v1490_v36 = vmul.f32 0.01, %v1448_v24 }
 0x509   :  { %vm1473_vm0 = vcmp.ge.f32.partialorder %v1443_v34, 0.0  ;;  %v1489_v38 = vmul.f32 0.01, %v1443_v34  ;;  %v2032_v39 = vpop.f32.mrb[46].mxu0 }
 0x50a   :  { %v1506_v41 = vsel %vm1474_vm15, %v1448_v24, %v1490_v36  ;;  %v1458_v42 = vadd.f32 %v2032_v39, %v1314_v37  ;;  %v1452_v43 = vpop.f32.mrb[47].mxu0  ;;  %2213 = vmatpush3.bf16.msra.mxu1 %v2212_v35 }
 0x50b   :  { %v1505_v26 = vsel %vm1473_vm0, %v1443_v34, %v1489_v38  ;;  %v1453_v44 = vadd.f32 %v1452_v43, %v1310_v40  ;;  %2214 = vmatprep.subr.bf16.mxu1 %v2342_v10 }
 0x50c   :  { %v2215_v45 = vpack.c.bf16 %v1506_v41, %v1505_v26  ;;  %vm1476_vm1 = vcmp.ge.f32.partialorder %v1458_v42, 0.0  ;;  %v1492_v46 = vmul.f32 0.01, %v1458_v42 }
 0x50d   :  { %vm1475_vm2 = vcmp.ge.f32.partialorder %v1453_v44, 0.0  ;;  %v1491_v47 = vmul.f32 0.01, %v1453_v44 }
 0x50e   :  { %v1508_v48 = vsel %vm1476_vm1, %v1458_v42, %v1492_v46  ;;  %2216 = vmatpush3.bf16.msra.mxu1 %v2215_v45 }
 0x50f   :  { %v1507_v49 = vsel %vm1475_vm2, %v1453_v44, %v1491_v47  ;;  %2217 = vmatprep.subr.bf16.mxu1 %v2342_v10 }
 0x510   :  { %v2218_v50 = vpack.c.bf16 %v1508_v48, %v1507_v49 }
 0x512   :  { %2219 = vmatpush3.bf16.msra.mxu1 %v2218_v50 }
 0x515   :  { %2066 = vmatmul.mubr.f32.vlgmr.msra.gmra.mrb[32].mxu1 %v1509_v51 }
 0x5e8   :  { %v1580_v53 = vpop.f32.mrb[32].mxu1 }
 0x5e9   :  { %v2067_v7 = vpop.f32.mrb[33].mxu1  ;;  %v1581_v8 = vadd.f32 %v1580_v53, %v1512_v52 }
 0x5eb   :  { %v1584_v9 = vmax.f32 %v1581_v8, 0.0 }
 0x5ed   :  { %v1585_v11 = vmin.f32 %v1584_v9, 6.0 }
 0x5ef   :  { %v1586_v13 = vmul.f32 0.16667, %v1585_v11 }
 0x5f1   :  { %1587 = vst [vmem:[#allocation7] sm:$0x3] %v1586_v13 }
 0x5f2   :  { %2316 = shalt.err (!%p2313_p6)
}
 0x5f3   :  { %s2317_s0 = scalar_lea.hbm %s2806_s8, 32 }
 0x5f4   :  { %p2318_p7 = scmp.ne.s32.totalorder %s2806_s8, %s2317_s0  ;;  %p2321_p8 = scmp.lt.u32.totalorder %s2317_s0, %s2806_s8 }
 0x5f6   :  { %p2323_p9 = pnand %p2321_p8, %p2318_p7 }
 0x5f8   :  { %2326 = shalt.err (!%p2323_p9)
}
 0x5f9   :  { %1597 = dma.vmem_to_hbm [thread:$0]  %s1595_s13, 32, %s2806_s8, [#allocation4]  }
 0x5fa   :  { %2331 = dma.done.wait [#allocation4], 32  }
 0x5fb   :  { %2332 = vsyncadd [#allocation4], 4294967264 }
 0x5fc   :  { %1601 = vsyncpa [#allocation3], 1 }
 0x5fd   :  { %1602 = vsyncpa [#allocation6], 1 }
 0x5fe   :  { %1603 = vsyncpa [#allocation4], 1 }

</bundles_post_ra>
